<compile_context>
chip_gen: v6e
topology: v6e:2x2x1
jax: 0.10.0
libtpu: 0.0.40
codegen_flags: <defaults>
</compile_context>

<pallas_src>
import functools

import jax
import jax.numpy as jnp
import numpy as np
from jax.experimental import pallas as pl
from jax.experimental.pallas import tpu as pltpu

_GUARD = 8  # sublane-aligned guard rows at the front of the halo slab


def _bridge_down_kernel(xi_ref, xt_ref, xb_ref, w_ref, b_ref, o_ref,
                        s_ref, acc_ref, *, wp, rb):
    # xi_ref : (4, RB*Wp, C_in)  pool-window shards, this tile's RB pooled rows
    # xt_ref : (4, Wp,    C_in)  shards for the pooled row just above the tile
    # xb_ref : (4, Wp,    C_in)  shards for the pooled row just below the tile
    # w_ref  : (9, C_in, C_out)  conv taps, tap t = (ky, kx) = (t // 3, t % 3)
    # b_ref  : (1, C_out)
    # o_ref  : (RB*Wp, C_out)
    # s_ref  : (GUARD + (RB+2)*Wp + 8, C_in)  VMEM halo slab, spatial-major
    # acc_ref: (RB*Wp, C_out) f32 accumulator
    lt = rb * wp                       # spatial extent of one tile
    r = pl.program_id(1)
    nr = pl.num_programs(1)
    g = _GUARD

    def pool4(ref):
        # 2x2 max pool == elementwise max of the 4 window shards (VPU).
        return jnp.maximum(jnp.maximum(ref[0], ref[1]),
                           jnp.maximum(ref[2], ref[3]))

    # ---- build the vertically padded slab (only the 2 halo rows are
    #      conditional; no full-slab zero fill, all stores sublane-aligned) ----
    s_ref[g + wp:g + wp + lt, :] = pool4(xi_ref)
    top = pool4(xt_ref)
    s_ref[g:g + wp, :] = jnp.where(r > 0, top, jnp.zeros_like(top))
    bot = pool4(xb_ref)
    s_ref[g + wp + lt:g + 2 * wp + lt, :] = jnp.where(
        r < nr - 1, bot, jnp.zeros_like(bot))
    # (guard rows stay uninitialized: the only positions that read them are
    #  masked out below, and jnp.where is a bitwise-safe select.)

    # ---- column masks for the horizontally shifted taps (hoisted) ----
    col = jax.lax.broadcasted_iota(jnp.int32, (lt, 1), 0) % wp
    not_first_col = col != 0           # valid positions for kx == 0 taps
    not_last_col = col != wp - 1       # valid positions for kx == 2 taps

    # ---- 9 shifted-tap matmuls: (RB*Wp, C_in) @ (C_in, C_out) on the MXU ----
    for t in range(9):
        ky, kx = t // 3, t % 3
        start = g + ky * wp + (kx - 1)         # static sublane offset
        patch = s_ref[start:start + lt, :]     # (RB*Wp, C_in)
        if kx == 0:
            patch = jnp.where(not_first_col, patch, jnp.zeros_like(patch))
        elif kx == 2:
            patch = jnp.where(not_last_col, patch, jnp.zeros_like(patch))
        contrib = jnp.dot(patch, w_ref[t], preferred_element_type=jnp.float32)
        if t == 0:
            acc_ref[...] = contrib
        else:
            acc_ref[...] += contrib

    # ---- bias + ReLU at finalize; one lane-dense block store ----
    out = acc_ref[...] + b_ref[...].astype(jnp.float32)
    o_ref[...] = jnp.maximum(out, 0.0).astype(o_ref.dtype)


def bridge_down(x, weight, bias, *, row_block=None):
    """x: (N, C_in, H, W) NCHW; weight: (C_out, C_in, 3, 3); bias: (C_out,)."""
    n, c_in, h, w = x.shape
    hp, wp = h // 2, w // 2                     # MaxPool2d(2) floors odd dims
    x = x[:, :, :2 * hp, :2 * wp]
    c_out = weight.shape[0]
    assert wp % 8 == 0, "pooled width must be a multiple of 8 (sublane tiling)"

    # Row-block size: must divide Hp; keep >= ~1024 spatial positions per tile.
    if row_block is None:
        rb = hp
        while rb % 2 == 0 and (rb // 2) * wp >= 1024:
            rb //= 2
    else:
        rb = row_block
    assert hp % rb == 0
    nr = hp // rb
    lt = rb * wp

    # --- plain-JAX layout glue (these become no-ops in an NHWC pipeline) ---
    # Split each 2x2 pool window into 4 shards, channels-last, spatial flattened:
    #   x4[b, 2*dy+dx, i*Wp + j, ci] = x[b, ci, 2*i+dy, 2*j+dx]
    x4 = (x.reshape(n, c_in, hp, 2, wp, 2)
            .transpose(0, 3, 5, 2, 4, 1)
            .reshape(n, 4, hp * wp, c_in))
    # Conv taps: w9[t, ci, co] = weight[co, ci, t//3, t%3]
    w9 = weight.transpose(2, 3, 1, 0).reshape(9, c_in, c_out)
    b2 = bias.reshape(1, c_out)

    # --- VMEM budget estimate (padded to (8,128) tiles, double-buffered I/O) ---
    itemsize = x.dtype.itemsize

    def rup(v, m):
        return -(-v // m) * m

    lane_ci = rup(c_in, 128) * itemsize
    lane_co = rup(c_out, 128)
    blk_in = 4 * rup(lt, 8) * lane_ci
    blk_halo = 4 * rup(wp, 8) * lane_ci
    blk_out = rup(lt, 8) * lane_co * itemsize
    scratch = (rup(_GUARD + (rb + 2) * wp + 8, 8) * lane_ci
               + rup(lt, 8) * lane_co * 4)
    wgt = 9 * rup(c_in, 8) * lane_co * itemsize + 8 * lane_co * itemsize
    est = 2 * (blk_in + 2 * blk_halo + blk_out) + scratch + wgt
    vmem_limit = int(min(max(2 * est, 16 * 2 ** 20), 64 * 2 ** 20))

    flops = 2 * n * hp * wp * 9 * c_in * c_out
    bytes_accessed = int((x4.size + n * hp * wp * c_out + w9.size) * itemsize)

    kernel = functools.partial(_bridge_down_kernel, wp=wp, rb=rb)

    out = pl.pallas_call(
        kernel,
        out_shape=jax.ShapeDtypeStruct((n, hp * wp, c_out), x.dtype),
        grid=(n, nr),
        in_specs=[
            # interior pooled rows of this tile
            pl.BlockSpec((None, 4, lt, c_in), lambda b, r: (b, 0, r, 0)),
            # pooled row just above the tile (clamped; zeroed in-kernel at r==0)
            pl.BlockSpec((None, 4, wp, c_in),
                         lambda b, r: (b, 0, jnp.maximum(r * rb - 1, 0), 0)),
            # pooled row just below the tile (clamped; zeroed at r==nr-1)
            pl.BlockSpec((None, 4, wp, c_in),
                         lambda b, r: (b, 0, jnp.minimum(r * rb + rb, hp - 1), 0)),
            pl.BlockSpec((9, c_in, c_out), lambda b, r: (0, 0, 0)),
            pl.BlockSpec((1, c_out), lambda b, r: (0, 0)),
        ],
        out_specs=pl.BlockSpec((None, lt, c_out), lambda b, r: (b, r, 0)),
        scratch_shapes=[
            pltpu.VMEM((_GUARD + (rb + 2) * wp + 8, c_in), x.dtype),
            pltpu.VMEM((lt, c_out), jnp.float32),
        ],
        compiler_params=pltpu.CompilerParams(
            dimension_semantics=("parallel", "parallel"),
            vmem_limit_bytes=vmem_limit),
        cost_estimate=pl.CostEstimate(
            flops=flops, transcendentals=0, bytes_accessed=bytes_accessed),
    )(x4, x4, x4, w9, b2)

    # Back to NCHW (free reshape + one transpose; a no-op in an NHWC pipeline).
    return out.reshape(n, hp, wp, c_out).transpose(0, 3, 1, 2)


def _reference_forward(x, weight, bias):
    """Pure-JAX reference matching MaxPool2d(2) -> Conv2d(3, pad=1) -> ReLU."""
    n, c, h, w = x.shape
    hp, wp = h // 2, w // 2
    xc = x[:, :, :2 * hp, :2 * wp]
    pooled = xc.reshape(n, c, hp, 2, wp, 2).max(axis=(3, 5))
    y = jax.lax.conv_general_dilated(
        pooled, weight, window_strides=(1, 1), padding=((1, 1), (1, 1)),
        dimension_numbers=("NCHW", "OIHW", "NCHW"))
    return jnp.maximum(y + bias.reshape(1, -1, 1, 1), 0.0)


if __name__ == "__main__":
    N, C_IN, C_OUT, H, W = 2, 4, 8, 16, 16

    key = jax.random.PRNGKey(0)
    k_x, k_w, k_b = jax.random.split(key, 3)
    x = jax.random.normal(k_x, (N, C_IN, H, W), dtype=jnp.float32)
    weight = jax.random.normal(k_w, (C_OUT, C_IN, 3, 3), dtype=jnp.float32) * 0.1
    bias = jax.random.normal(k_b, (C_OUT,), dtype=jnp.float32) * 0.1

    out = jax.block_until_ready(bridge_down(x, weight, bias))
    ref = jax.block_until_ready(_reference_forward(x, weight, bias))

    np.testing.assert_allclose(np.asarray(out), np.asarray(ref),
                               rtol=1e-3, atol=1e-3)
    assert out.shape == (N, C_OUT, H // 2, W // 2)
    print("KERNEL_OK")
</pallas_src>

<mosaic_0001>
module attributes {stable_mosaic.version = 11 : i64} {
  func.func @_bridge_down_kernel(%arg0: i32, %arg1: i32, %arg2: memref<1x4x64x4xf32, #tpu.memory_space<vmem>>, %arg3: memref<1x4x8x4xf32, #tpu.memory_space<vmem>>, %arg4: memref<1x4x8x4xf32, #tpu.memory_space<vmem>>, %arg5: memref<9x4x8xf32, #tpu.memory_space<vmem>>, %arg6: memref<1x8xf32, #tpu.memory_space<vmem>>, %arg7: memref<1x64x8xf32, #tpu.memory_space<vmem>>, %arg8: memref<96x4xf32, #tpu.memory_space<vmem>>, %arg9: memref<64x8xf32, #tpu.memory_space<vmem>>) attributes {dimension_semantics = [#tpu.dimension_semantics<parallel>, #tpu.dimension_semantics<parallel>], iteration_bounds = array<i64: 2, 1>, scalar_prefetch = 0 : i64, scratch_operands = 2 : i64, tpu.core_type = #tpu.core_type<tc>, window_params = [{transform_indices = @transform_0, window_bounds = array<i64: 1, 4, 64, 4>}, {transform_indices = @transform_1, window_bounds = array<i64: 1, 4, 8, 4>}, {transform_indices = @transform_2, window_bounds = array<i64: 1, 4, 8, 4>}, {pipeline_mode = #tpu.pipeline_mode<synchronous>, transform_indices = @transform_3, window_bounds = array<i64: 9, 4, 8>}, {pipeline_mode = #tpu.pipeline_mode<synchronous>, transform_indices = @transform_4, window_bounds = array<i64: 1, 8>}, {transform_indices = @transform_5, window_bounds = array<i64: 1, 64, 8>}]} {
    %c0 = arith.constant 0 : index
    %c0_0 = arith.constant 0 : index
    %c0_1 = arith.constant 0 : index
    %c0_2 = arith.constant 0 : index
    %0 = vector.load %arg2[%c0, %c0_0, %c0_1, %c0_2] : memref<1x4x64x4xf32, #tpu.memory_space<vmem>>, vector<1x1x64x4xf32>
    %1 = vector.shape_cast %0 : vector<1x1x64x4xf32> to vector<64x4xf32>
    %c0_3 = arith.constant 0 : index
    %c1 = arith.constant 1 : index
    %c0_4 = arith.constant 0 : index
    %c0_5 = arith.constant 0 : index
    %2 = vector.load %arg2[%c0_3, %c1, %c0_4, %c0_5] : memref<1x4x64x4xf32, #tpu.memory_space<vmem>>, vector<1x1x64x4xf32>
    %3 = vector.shape_cast %2 : vector<1x1x64x4xf32> to vector<64x4xf32>
    %4 = arith.maximumf %1, %3 : vector<64x4xf32>
    %c0_6 = arith.constant 0 : index
    %c2 = arith.constant 2 : index
    %c0_7 = arith.constant 0 : index
    %c0_8 = arith.constant 0 : index
    %5 = vector.load %arg2[%c0_6, %c2, %c0_7, %c0_8] : memref<1x4x64x4xf32, #tpu.memory_space<vmem>>, vector<1x1x64x4xf32>
    %6 = vector.shape_cast %5 : vector<1x1x64x4xf32> to vector<64x4xf32>
    %c0_9 = arith.constant 0 : index
    %c3 = arith.constant 3 : index
    %c0_10 = arith.constant 0 : index
    %c0_11 = arith.constant 0 : index
    %7 = vector.load %arg2[%c0_9, %c3, %c0_10, %c0_11] : memref<1x4x64x4xf32, #tpu.memory_space<vmem>>, vector<1x1x64x4xf32>
    %8 = vector.shape_cast %7 : vector<1x1x64x4xf32> to vector<64x4xf32>
    %9 = arith.maximumf %6, %8 : vector<64x4xf32>
    %10 = arith.maximumf %4, %9 : vector<64x4xf32>
    %c16 = arith.constant 16 : index
    %c0_12 = arith.constant 0 : index
    %11 = vector.load %arg8[%c16, %c0_12] : memref<96x4xf32, #tpu.memory_space<vmem>>, vector<64x4xf32>
    tpu.vector_store %arg8[%c16, %c0_12], %10 {strides = array<i32>} : memref<96x4xf32, #tpu.memory_space<vmem>>, vector<64x4xf32>,
    %c0_13 = arith.constant 0 : index
    %c0_14 = arith.constant 0 : index
    %c0_15 = arith.constant 0 : index
    %c0_16 = arith.constant 0 : index
    %12 = vector.load %arg3[%c0_13, %c0_14, %c0_15, %c0_16] : memref<1x4x8x4xf32, #tpu.memory_space<vmem>>, vector<1x1x8x4xf32>
    %13 = vector.shape_cast %12 : vector<1x1x8x4xf32> to vector<8x4xf32>
    %c0_17 = arith.constant 0 : index
    %c1_18 = arith.constant 1 : index
    %c0_19 = arith.constant 0 : index
    %c0_20 = arith.constant 0 : index
    %14 = vector.load %arg3[%c0_17, %c1_18, %c0_19, %c0_20] : memref<1x4x8x4xf32, #tpu.memory_space<vmem>>, vector<1x1x8x4xf32>
    %15 = vector.shape_cast %14 : vector<1x1x8x4xf32> to vector<8x4xf32>
    %16 = arith.maximumf %13, %15 : vector<8x4xf32>
    %c0_21 = arith.constant 0 : index
    %c2_22 = arith.constant 2 : index
    %c0_23 = arith.constant 0 : index
    %c0_24 = arith.constant 0 : index
    %17 = vector.load %arg3[%c0_21, %c2_22, %c0_23, %c0_24] : memref<1x4x8x4xf32, #tpu.memory_space<vmem>>, vector<1x1x8x4xf32>
    %18 = vector.shape_cast %17 : vector<1x1x8x4xf32> to vector<8x4xf32>
    %c0_25 = arith.constant 0 : index
    %c3_26 = arith.constant 3 : index
    %c0_27 = arith.constant 0 : index
    %c0_28 = arith.constant 0 : index
    %19 = vector.load %arg3[%c0_25, %c3_26, %c0_27, %c0_28] : memref<1x4x8x4xf32, #tpu.memory_space<vmem>>, vector<1x1x8x4xf32>
    %20 = vector.shape_cast %19 : vector<1x1x8x4xf32> to vector<8x4xf32>
    %21 = arith.maximumf %18, %20 : vector<8x4xf32>
    %22 = arith.maximumf %16, %21 : vector<8x4xf32>
    %c0_i32 = arith.constant 0 : i32
    %23 = arith.cmpi sgt, %arg1, %c0_i32 : i32
    %cst = arith.constant 0.000000e+00 : f32
    %24 = vector.broadcast %cst : f32 to vector<8x4xf32>
    %25 = arith.select %23, %22, %24 : vector<8x4xf32>
    %c8 = arith.constant 8 : index
    %c0_29 = arith.constant 0 : index
    %26 = vector.load %arg8[%c8, %c0_29] : memref<96x4xf32, #tpu.memory_space<vmem>>, vector<8x4xf32>
    tpu.vector_store %arg8[%c8, %c0_29], %25 {strides = array<i32>} : memref<96x4xf32, #tpu.memory_space<vmem>>, vector<8x4xf32>,
    %c0_30 = arith.constant 0 : index
    %c0_31 = arith.constant 0 : index
    %c0_32 = arith.constant 0 : index
    %c0_33 = arith.constant 0 : index
    %27 = vector.load %arg4[%c0_30, %c0_31, %c0_32, %c0_33] : memref<1x4x8x4xf32, #tpu.memory_space<vmem>>, vector<1x1x8x4xf32>
    %28 = vector.shape_cast %27 : vector<1x1x8x4xf32> to vector<8x4xf32>
    %c0_34 = arith.constant 0 : index
    %c1_35 = arith.constant 1 : index
    %c0_36 = arith.constant 0 : index
    %c0_37 = arith.constant 0 : index
    %29 = vector.load %arg4[%c0_34, %c1_35, %c0_36, %c0_37] : memref<1x4x8x4xf32, #tpu.memory_space<vmem>>, vector<1x1x8x4xf32>
    %30 = vector.shape_cast %29 : vector<1x1x8x4xf32> to vector<8x4xf32>
    %31 = arith.maximumf %28, %30 : vector<8x4xf32>
    %c0_38 = arith.constant 0 : index
    %c2_39 = arith.constant 2 : index
    %c0_40 = arith.constant 0 : index
    %c0_41 = arith.constant 0 : index
    %32 = vector.load %arg4[%c0_38, %c2_39, %c0_40, %c0_41] : memref<1x4x8x4xf32, #tpu.memory_space<vmem>>, vector<1x1x8x4xf32>
    %33 = vector.shape_cast %32 : vector<1x1x8x4xf32> to vector<8x4xf32>
    %c0_42 = arith.constant 0 : index
    %c3_43 = arith.constant 3 : index
    %c0_44 = arith.constant 0 : index
    %c0_45 = arith.constant 0 : index
    %34 = vector.load %arg4[%c0_42, %c3_43, %c0_44, %c0_45] : memref<1x4x8x4xf32, #tpu.memory_space<vmem>>, vector<1x1x8x4xf32>
    %35 = vector.shape_cast %34 : vector<1x1x8x4xf32> to vector<8x4xf32>
    %36 = arith.maximumf %33, %35 : vector<8x4xf32>
    %37 = arith.maximumf %31, %36 : vector<8x4xf32>
    %c0_i32_46 = arith.constant 0 : i32
    %38 = arith.cmpi slt, %arg1, %c0_i32_46 : i32
    %cst_47 = arith.constant 0.000000e+00 : f32
    %39 = vector.broadcast %cst_47 : f32 to vector<8x4xf32>
    %40 = arith.select %38, %37, %39 : vector<8x4xf32>
    %c80 = arith.constant 80 : index
    %c0_48 = arith.constant 0 : index
    %41 = vector.load %arg8[%c80, %c0_48] : memref<96x4xf32, #tpu.memory_space<vmem>>, vector<8x4xf32>
    tpu.vector_store %arg8[%c80, %c0_48], %40 {strides = array<i32>} : memref<96x4xf32, #tpu.memory_space<vmem>>, vector<8x4xf32>,
    %42 = tpu.iota {dimensions = array<i32: 0>} : vector<64x1xi32>
    %c8_i32 = arith.constant 8 : i32
    %c0_i32_49 = arith.constant 0 : i32
    %43 = arith.cmpi eq, %c8_i32, %c0_i32_49 : i32
    %c1_i32 = arith.constant 1 : i32
    %44 = arith.select %43, %c1_i32, %c8_i32 : i32
    %45 = vector.broadcast %44 : i32 to vector<64x1xi32>
    %46 = arith.remsi %42, %45 : vector<64x1xi32>
    %c0_i32_50 = arith.constant 0 : i32
    %47 = vector.broadcast %c0_i32_50 : i32 to vector<64x1xi32>
    %48 = arith.cmpi ne, %46, %47 : vector<64x1xi32>
    %c0_i32_51 = arith.constant 0 : i32
    %49 = vector.broadcast %c0_i32_51 : i32 to vector<64x1xi32>
    %50 = arith.cmpi slt, %46, %49 : vector<64x1xi32>
    %c0_i32_52 = arith.constant 0 : i32
    %51 = arith.cmpi slt, %44, %c0_i32_52 : i32
    %52 = vector.broadcast %51 : i1 to vector<64x1xi1>
    %53 = vector.broadcast %52 : vector<64x1xi1> to vector<64x1xi1>
    %54 = arith.xori %50, %53 : vector<64x1xi1>
    %55 = arith.andi %54, %48 : vector<64x1xi1>
    %56 = vector.broadcast %44 : i32 to vector<64x1xi32>
    %57 = arith.addi %46, %56 : vector<64x1xi32>
    %58 = arith.select %55, %57, %46 : vector<64x1xi1>, vector<64x1xi32>
    %c0_i32_53 = arith.constant 0 : i32
    %59 = vector.broadcast %c0_i32_53 : i32 to vector<64x1xi32>
    %60 = arith.cmpi ne, %58, %59 : vector<64x1xi32>
    %c7_i32 = arith.constant 7 : i32
    %61 = vector.broadcast %c7_i32 : i32 to vector<64x1xi32>
    %62 = arith.cmpi ne, %58, %61 : vector<64x1xi32>
    %c7 = arith.constant 7 : index
    %c0_54 = arith.constant 0 : index
    %63 = vector.load %arg8[%c7, %c0_54] : memref<96x4xf32, #tpu.memory_space<vmem>>, vector<64x4xf32>
    %cst_55 = arith.constant 0.000000e+00 : f32
    %64 = vector.broadcast %cst_55 : f32 to vector<64x4xf32>
    %65 = vector.shape_cast %60 : vector<64x1xi1> to vector<64x1xi1>
    %66 = vector.broadcast %65 : vector<64x1xi1> to vector<64x4xi1>
    %67 = arith.select %66, %63, %64 : vector<64x4xi1>, vector<64x4xf32>
    %c0_56 = arith.constant 0 : index
    %c0_57 = arith.constant 0 : index
    %c0_58 = arith.constant 0 : index
    %68 = vector.load %arg5[%c0_56, %c0_57, %c0_58] : memref<9x4x8xf32, #tpu.memory_space<vmem>>, vector<1x4x8xf32>
    %69 = vector.shape_cast %68 : vector<1x4x8xf32> to vector<4x8xf32>
    %cst_59 = arith.constant dense<0.000000e+00> : vector<64x8xf32>
    %70 = tpu.matmul %67, %69, %cst_59 {dimension_numbers = #tpu.dot_dimension_numbers<[1], [0], [0], [1], [0, 0, 1, 1], [], []>} : vector<64x4xf32>, vector<4x8xf32>, vector<64x8xf32> -> vector<64x8xf32>
    %c0_60 = arith.constant 0 : index
    %c0_61 = arith.constant 0 : index
    %71 = vector.load %arg9[%c0_60, %c0_61] : memref<64x8xf32, #tpu.memory_space<vmem>>, vector<64x8xf32>
    tpu.vector_store %arg9[%c0_60, %c0_61], %70 {strides = array<i32>} : memref<64x8xf32, #tpu.memory_space<vmem>>, vector<64x8xf32>,
    %c8_62 = arith.constant 8 : index
    %c0_63 = arith.constant 0 : index
    %72 = vector.load %arg8[%c8_62, %c0_63] : memref<96x4xf32, #tpu.memory_space<vmem>>, vector<64x4xf32>
    %c1_64 = arith.constant 1 : index
    %c0_65 = arith.constant 0 : index
    %c0_66 = arith.constant 0 : index
    %73 = vector.load %arg5[%c1_64, %c0_65, %c0_66] : memref<9x4x8xf32, #tpu.memory_space<vmem>>, vector<1x4x8xf32>
    %74 = vector.shape_cast %73 : vector<1x4x8xf32> to vector<4x8xf32>
    %cst_67 = arith.constant dense<0.000000e+00> : vector<64x8xf32>
    %75 = tpu.matmul %72, %74, %cst_67 {dimension_numbers = #tpu.dot_dimension_numbers<[1], [0], [0], [1], [0, 0, 1, 1], [], []>} : vector<64x4xf32>, vector<4x8xf32>, vector<64x8xf32> -> vector<64x8xf32>
    %c0_68 = arith.constant 0 : index
    %c0_69 = arith.constant 0 : index
    %76 = vector.load %arg9[%c0_68, %c0_69] : memref<64x8xf32, #tpu.memory_space<vmem>>, vector<64x8xf32>
    %77 = arith.addf %76, %75 : vector<64x8xf32>
    %c0_70 = arith.constant 0 : index
    %c0_71 = arith.constant 0 : index
    %78 = vector.load %arg9[%c0_70, %c0_71] : memref<64x8xf32, #tpu.memory_space<vmem>>, vector<64x8xf32>
    tpu.vector_store %arg9[%c0_70, %c0_71], %77 {strides = array<i32>} : memref<64x8xf32, #tpu.memory_space<vmem>>, vector<64x8xf32>,
    %c9 = arith.constant 9 : index
    %c0_72 = arith.constant 0 : index
    %79 = vector.load %arg8[%c9, %c0_72] : memref<96x4xf32, #tpu.memory_space<vmem>>, vector<64x4xf32>
    %cst_73 = arith.constant 0.000000e+00 : f32
    %80 = vector.broadcast %cst_73 : f32 to vector<64x4xf32>
    %81 = vector.shape_cast %62 : vector<64x1xi1> to vector<64x1xi1>
    %82 = vector.broadcast %81 : vector<64x1xi1> to vector<64x4xi1>
    %83 = arith.select %82, %79, %80 : vector<64x4xi1>, vector<64x4xf32>
    %c2_74 = arith.constant 2 : index
    %c0_75 = arith.constant 0 : index
    %c0_76 = arith.constant 0 : index
    %84 = vector.load %arg5[%c2_74, %c0_75, %c0_76] : memref<9x4x8xf32, #tpu.memory_space<vmem>>, vector<1x4x8xf32>
    %85 = vector.shape_cast %84 : vector<1x4x8xf32> to vector<4x8xf32>
    %cst_77 = arith.constant dense<0.000000e+00> : vector<64x8xf32>
    %86 = tpu.matmul %83, %85, %cst_77 {dimension_numbers = #tpu.dot_dimension_numbers<[1], [0], [0], [1], [0, 0, 1, 1], [], []>} : vector<64x4xf32>, vector<4x8xf32>, vector<64x8xf32> -> vector<64x8xf32>
    %c0_78 = arith.constant 0 : index
    %c0_79 = arith.constant 0 : index
    %87 = vector.load %arg9[%c0_78, %c0_79] : memref<64x8xf32, #tpu.memory_space<vmem>>, vector<64x8xf32>
    %88 = arith.addf %87, %86 : vector<64x8xf32>
    %c0_80 = arith.constant 0 : index
    %c0_81 = arith.constant 0 : index
    %89 = vector.load %arg9[%c0_80, %c0_81] : memref<64x8xf32, #tpu.memory_space<vmem>>, vector<64x8xf32>
    tpu.vector_store %arg9[%c0_80, %c0_81], %88 {strides = array<i32>} : memref<64x8xf32, #tpu.memory_space<vmem>>, vector<64x8xf32>,
    %c15 = arith.constant 15 : index
    %c0_82 = arith.constant 0 : index
    %90 = vector.load %arg8[%c15, %c0_82] : memref<96x4xf32, #tpu.memory_space<vmem>>, vector<64x4xf32>
    %cst_83 = arith.constant 0.000000e+00 : f32
    %91 = vector.broadcast %cst_83 : f32 to vector<64x4xf32>
    %92 = vector.shape_cast %60 : vector<64x1xi1> to vector<64x1xi1>
    %93 = vector.broadcast %92 : vector<64x1xi1> to vector<64x4xi1>
    %94 = arith.select %93, %90, %91 : vector<64x4xi1>, vector<64x4xf32>
    %c3_84 = arith.constant 3 : index
    %c0_85 = arith.constant 0 : index
    %c0_86 = arith.constant 0 : index
    %95 = vector.load %arg5[%c3_84, %c0_85, %c0_86] : memref<9x4x8xf32, #tpu.memory_space<vmem>>, vector<1x4x8xf32>
    %96 = vector.shape_cast %95 : vector<1x4x8xf32> to vector<4x8xf32>
    %cst_87 = arith.constant dense<0.000000e+00> : vector<64x8xf32>
    %97 = tpu.matmul %94, %96, %cst_87 {dimension_numbers = #tpu.dot_dimension_numbers<[1], [0], [0], [1], [0, 0, 1, 1], [], []>} : vector<64x4xf32>, vector<4x8xf32>, vector<64x8xf32> -> vector<64x8xf32>
    %c0_88 = arith.constant 0 : index
    %c0_89 = arith.constant 0 : index
    %98 = vector.load %arg9[%c0_88, %c0_89] : memref<64x8xf32, #tpu.memory_space<vmem>>, vector<64x8xf32>
    %99 = arith.addf %98, %97 : vector<64x8xf32>
    %c0_90 = arith.constant 0 : index
    %c0_91 = arith.constant 0 : index
    %100 = vector.load %arg9[%c0_90, %c0_91] : memref<64x8xf32, #tpu.memory_space<vmem>>, vector<64x8xf32>
    tpu.vector_store %arg9[%c0_90, %c0_91], %99 {strides = array<i32>} : memref<64x8xf32, #tpu.memory_space<vmem>>, vector<64x8xf32>,
    %c16_92 = arith.constant 16 : index
    %c0_93 = arith.constant 0 : index
    %101 = vector.load %arg8[%c16_92, %c0_93] : memref<96x4xf32, #tpu.memory_space<vmem>>, vector<64x4xf32>
    %c4 = arith.constant 4 : index
    %c0_94 = arith.constant 0 : index
    %c0_95 = arith.constant 0 : index
    %102 = vector.load %arg5[%c4, %c0_94, %c0_95] : memref<9x4x8xf32, #tpu.memory_space<vmem>>, vector<1x4x8xf32>
    %103 = vector.shape_cast %102 : vector<1x4x8xf32> to vector<4x8xf32>
    %cst_96 = arith.constant dense<0.000000e+00> : vector<64x8xf32>
    %104 = tpu.matmul %101, %103, %cst_96 {dimension_numbers = #tpu.dot_dimension_numbers<[1], [0], [0], [1], [0, 0, 1, 1], [], []>} : vector<64x4xf32>, vector<4x8xf32>, vector<64x8xf32> -> vector<64x8xf32>
    %c0_97 = arith.constant 0 : index
    %c0_98 = arith.constant 0 : index
    %105 = vector.load %arg9[%c0_97, %c0_98] : memref<64x8xf32, #tpu.memory_space<vmem>>, vector<64x8xf32>
    %106 = arith.addf %105, %104 : vector<64x8xf32>
    %c0_99 = arith.constant 0 : index
    %c0_100 = arith.constant 0 : index
    %107 = vector.load %arg9[%c0_99, %c0_100] : memref<64x8xf32, #tpu.memory_space<vmem>>, vector<64x8xf32>
    tpu.vector_store %arg9[%c0_99, %c0_100], %106 {strides = array<i32>} : memref<64x8xf32, #tpu.memory_space<vmem>>, vector<64x8xf32>,
    %c17 = arith.constant 17 : index
    %c0_101 = arith.constant 0 : index
    %108 = vector.load %arg8[%c17, %c0_101] : memref<96x4xf32, #tpu.memory_space<vmem>>, vector<64x4xf32>
    %cst_102 = arith.constant 0.000000e+00 : f32
    %109 = vector.broadcast %cst_102 : f32 to vector<64x4xf32>
    %110 = vector.shape_cast %62 : vector<64x1xi1> to vector<64x1xi1>
    %111 = vector.broadcast %110 : vector<64x1xi1> to vector<64x4xi1>
    %112 = arith.select %111, %108, %109 : vector<64x4xi1>, vector<64x4xf32>
    %c5 = arith.constant 5 : index
    %c0_103 = arith.constant 0 : index
    %c0_104 = arith.constant 0 : index
    %113 = vector.load %arg5[%c5, %c0_103, %c0_104] : memref<9x4x8xf32, #tpu.memory_space<vmem>>, vector<1x4x8xf32>
    %114 = vector.shape_cast %113 : vector<1x4x8xf32> to vector<4x8xf32>
    %cst_105 = arith.constant dense<0.000000e+00> : vector<64x8xf32>
    %115 = tpu.matmul %112, %114, %cst_105 {dimension_numbers = #tpu.dot_dimension_numbers<[1], [0], [0], [1], [0, 0, 1, 1], [], []>} : vector<64x4xf32>, vector<4x8xf32>, vector<64x8xf32> -> vector<64x8xf32>
    %c0_106 = arith.constant 0 : index
    %c0_107 = arith.constant 0 : index
    %116 = vector.load %arg9[%c0_106, %c0_107] : memref<64x8xf32, #tpu.memory_space<vmem>>, vector<64x8xf32>
    %117 = arith.addf %116, %115 : vector<64x8xf32>
    %c0_108 = arith.constant 0 : index
    %c0_109 = arith.constant 0 : index
    %118 = vector.load %arg9[%c0_108, %c0_109] : memref<64x8xf32, #tpu.memory_space<vmem>>, vector<64x8xf32>
    tpu.vector_store %arg9[%c0_108, %c0_109], %117 {strides = array<i32>} : memref<64x8xf32, #tpu.memory_space<vmem>>, vector<64x8xf32>,
    %c23 = arith.constant 23 : index
    %c0_110 = arith.constant 0 : index
    %119 = vector.load %arg8[%c23, %c0_110] : memref<96x4xf32, #tpu.memory_space<vmem>>, vector<64x4xf32>
    %cst_111 = arith.constant 0.000000e+00 : f32
    %120 = vector.broadcast %cst_111 : f32 to vector<64x4xf32>
    %121 = vector.shape_cast %60 : vector<64x1xi1> to vector<64x1xi1>
    %122 = vector.broadcast %121 : vector<64x1xi1> to vector<64x4xi1>
    %123 = arith.select %122, %119, %120 : vector<64x4xi1>, vector<64x4xf32>
    %c6 = arith.constant 6 : index
    %c0_112 = arith.constant 0 : index
    %c0_113 = arith.constant 0 : index
    %124 = vector.load %arg5[%c6, %c0_112, %c0_113] : memref<9x4x8xf32, #tpu.memory_space<vmem>>, vector<1x4x8xf32>
    %125 = vector.shape_cast %124 : vector<1x4x8xf32> to vector<4x8xf32>
    %cst_114 = arith.constant dense<0.000000e+00> : vector<64x8xf32>
    %126 = tpu.matmul %123, %125, %cst_114 {dimension_numbers = #tpu.dot_dimension_numbers<[1], [0], [0], [1], [0, 0, 1, 1], [], []>} : vector<64x4xf32>, vector<4x8xf32>, vector<64x8xf32> -> vector<64x8xf32>
    %c0_115 = arith.constant 0 : index
    %c0_116 = arith.constant 0 : index
    %127 = vector.load %arg9[%c0_115, %c0_116] : memref<64x8xf32, #tpu.memory_space<vmem>>, vector<64x8xf32>
    %128 = arith.addf %127, %126 : vector<64x8xf32>
    %c0_117 = arith.constant 0 : index
    %c0_118 = arith.constant 0 : index
    %129 = vector.load %arg9[%c0_117, %c0_118] : memref<64x8xf32, #tpu.memory_space<vmem>>, vector<64x8xf32>
    tpu.vector_store %arg9[%c0_117, %c0_118], %128 {strides = array<i32>} : memref<64x8xf32, #tpu.memory_space<vmem>>, vector<64x8xf32>,
    %c24 = arith.constant 24 : index
    %c0_119 = arith.constant 0 : index
    %130 = vector.load %arg8[%c24, %c0_119] : memref<96x4xf32, #tpu.memory_space<vmem>>, vector<64x4xf32>
    %c7_120 = arith.constant 7 : index
    %c0_121 = arith.constant 0 : index
    %c0_122 = arith.constant 0 : index
    %131 = vector.load %arg5[%c7_120, %c0_121, %c0_122] : memref<9x4x8xf32, #tpu.memory_space<vmem>>, vector<1x4x8xf32>
    %132 = vector.shape_cast %131 : vector<1x4x8xf32> to vector<4x8xf32>
    %cst_123 = arith.constant dense<0.000000e+00> : vector<64x8xf32>
    %133 = tpu.matmul %130, %132, %cst_123 {dimension_numbers = #tpu.dot_dimension_numbers<[1], [0], [0], [1], [0, 0, 1, 1], [], []>} : vector<64x4xf32>, vector<4x8xf32>, vector<64x8xf32> -> vector<64x8xf32>
    %c0_124 = arith.constant 0 : index
    %c0_125 = arith.constant 0 : index
    %134 = vector.load %arg9[%c0_124, %c0_125] : memref<64x8xf32, #tpu.memory_space<vmem>>, vector<64x8xf32>
    %135 = arith.addf %134, %133 : vector<64x8xf32>
    %c0_126 = arith.constant 0 : index
    %c0_127 = arith.constant 0 : index
    %136 = vector.load %arg9[%c0_126, %c0_127] : memref<64x8xf32, #tpu.memory_space<vmem>>, vector<64x8xf32>
    tpu.vector_store %arg9[%c0_126, %c0_127], %135 {strides = array<i32>} : memref<64x8xf32, #tpu.memory_space<vmem>>, vector<64x8xf32>,
    %c25 = arith.constant 25 : index
    %c0_128 = arith.constant 0 : index
    %137 = vector.load %arg8[%c25, %c0_128] : memref<96x4xf32, #tpu.memory_space<vmem>>, vector<64x4xf32>
    %cst_129 = arith.constant 0.000000e+00 : f32
    %138 = vector.broadcast %cst_129 : f32 to vector<64x4xf32>
    %139 = vector.shape_cast %62 : vector<64x1xi1> to vector<64x1xi1>
    %140 = vector.broadcast %139 : vector<64x1xi1> to vector<64x4xi1>
    %141 = arith.select %140, %137, %138 : vector<64x4xi1>, vector<64x4xf32>
    %c8_130 = arith.constant 8 : index
    %c0_131 = arith.constant 0 : index
    %c0_132 = arith.constant 0 : index
    %142 = vector.load %arg5[%c8_130, %c0_131, %c0_132] : memref<9x4x8xf32, #tpu.memory_space<vmem>>, vector<1x4x8xf32>
    %143 = vector.shape_cast %142 : vector<1x4x8xf32> to vector<4x8xf32>
    %cst_133 = arith.constant dense<0.000000e+00> : vector<64x8xf32>
    %144 = tpu.matmul %141, %143, %cst_133 {dimension_numbers = #tpu.dot_dimension_numbers<[1], [0], [0], [1], [0, 0, 1, 1], [], []>} : vector<64x4xf32>, vector<4x8xf32>, vector<64x8xf32> -> vector<64x8xf32>
    %c0_134 = arith.constant 0 : index
    %c0_135 = arith.constant 0 : index
    %145 = vector.load %arg9[%c0_134, %c0_135] : memref<64x8xf32, #tpu.memory_space<vmem>>, vector<64x8xf32>
    %146 = arith.addf %145, %144 : vector<64x8xf32>
    %c0_136 = arith.constant 0 : index
    %c0_137 = arith.constant 0 : index
    %147 = vector.load %arg9[%c0_136, %c0_137] : memref<64x8xf32, #tpu.memory_space<vmem>>, vector<64x8xf32>
    tpu.vector_store %arg9[%c0_136, %c0_137], %146 {strides = array<i32>} : memref<64x8xf32, #tpu.memory_space<vmem>>, vector<64x8xf32>,
    %c0_138 = arith.constant 0 : index
    %c0_139 = arith.constant 0 : index
    %148 = vector.load %arg9[%c0_138, %c0_139] : memref<64x8xf32, #tpu.memory_space<vmem>>, vector<64x8xf32>
    %c0_140 = arith.constant 0 : index
    %c0_141 = arith.constant 0 : index
    %149 = vector.load %arg6[%c0_140, %c0_141] : memref<1x8xf32, #tpu.memory_space<vmem>>, vector<1x8xf32>
    %150 = vector.broadcast %149 : vector<1x8xf32> to vector<64x8xf32>
    %151 = arith.addf %148, %150 : vector<64x8xf32>
    %cst_142 = arith.constant 0.000000e+00 : f32
    %152 = vector.broadcast %cst_142 : f32 to vector<64x8xf32>
    %153 = arith.maximumf %151, %152 : vector<64x8xf32>
    %c0_143 = arith.constant 0 : index
    %c0_144 = arith.constant 0 : index
    %c0_145 = arith.constant 0 : index
    %154 = vector.load %arg7[%c0_143, %c0_144, %c0_145] : memref<1x64x8xf32, #tpu.memory_space<vmem>>, vector<1x64x8xf32>
    %155 = vector.shape_cast %154 : vector<1x64x8xf32> to vector<64x8xf32>
    %156 = vector.shape_cast %153 : vector<64x8xf32> to vector<1x64x8xf32>
    tpu.vector_store %arg7[%c0_143, %c0_144, %c0_145], %156 {strides = array<i32>} : memref<1x64x8xf32, #tpu.memory_space<vmem>>, vector<1x64x8xf32>,
    return
  }
  func.func @transform_0(%arg0: i32, %arg1: i32) -> (i32, i32, i32, i32) {
    %c0_i32 = arith.constant 0 : i32
    %c0_i32_0 = arith.constant 0 : i32
    %c0_i32_1 = arith.constant 0 : i32
    return %arg0, %c0_i32, %arg1, %c0_i32_0 : i32, i32, i32, i32
  }
  func.func @transform_1(%arg0: i32, %arg1: i32) -> (i32, i32, i32, i32) {
    %c8_i32 = arith.constant 8 : i32
    %0 = arith.muli %arg1, %c8_i32 : i32
    %c1_i32 = arith.constant 1 : i32
    %1 = arith.subi %0, %c1_i32 : i32
    %c0_i32 = arith.constant 0 : i32
    %2 = arith.maxsi %1, %c0_i32 : i32
    %c0_i32_0 = arith.constant 0 : i32
    %c0_i32_1 = arith.constant 0 : i32
    %c0_i32_2 = arith.constant 0 : i32
    return %arg0, %c0_i32_0, %2, %c0_i32_1 : i32, i32, i32, i32
  }
  func.func @transform_2(%arg0: i32, %arg1: i32) -> (i32, i32, i32, i32) {
    %c8_i32 = arith.constant 8 : i32
    %0 = arith.muli %arg1, %c8_i32 : i32
    %c8_i32_0 = arith.constant 8 : i32
    %1 = arith.addi %0, %c8_i32_0 : i32
    %c7_i32 = arith.constant 7 : i32
    %2 = arith.minsi %1, %c7_i32 : i32
    %c0_i32 = arith.constant 0 : i32
    %c0_i32_1 = arith.constant 0 : i32
    %c0_i32_2 = arith.constant 0 : i32
    return %arg0, %c0_i32, %2, %c0_i32_1 : i32, i32, i32, i32
  }
  func.func @transform_3(%arg0: i32, %arg1: i32) -> (i32, i32, i32) {
    %c0_i32 = arith.constant 0 : i32
    %c0_i32_0 = arith.constant 0 : i32
    %c0_i32_1 = arith.constant 0 : i32
    %c0_i32_2 = arith.constant 0 : i32
    return %c0_i32, %c0_i32_0, %c0_i32_1 : i32, i32, i32
  }
  func.func @transform_4(%arg0: i32, %arg1: i32) -> (i32, i32) {
    %c0_i32 = arith.constant 0 : i32
    %c0_i32_0 = arith.constant 0 : i32
    %c0_i32_1 = arith.constant 0 : i32
    return %c0_i32, %c0_i32_0 : i32, i32
  }
  func.func @transform_5(%arg0: i32, %arg1: i32) -> (i32, i32, i32) {
    %c0_i32 = arith.constant 0 : i32
    %c0_i32_0 = arith.constant 0 : i32
    return %arg0, %arg1, %c0_i32 : i32, i32, i32
  }
}

</mosaic_0001>

<bundles_post_ra>
// kernel: tpu_custom_call.1
= control target key start
LH: loop header
LB: loop body
LE: loop exit
PB: predicated region body
PF: predicated region fallthrough
CT: control target
= control target key end

     0   :  { %s2842_s18 = smov 0   ;;  %s2844_s19 = smov 0   ;;  %s3460_s0 = inlined_call_operand.vmem [shape: f32[2,4,64,4], index: 0, kind: input, shape index: {}]   ;;  %s3461_s1 = inlined_call_operand.vmem [shape: f32[2,4,64,4], index: 1, kind: input, shape index: {}]   ;;  %s3462_s2 = inlined_call_operand.vmem [shape: f32[2,4,64,4], index: 2, kind: input, shape index: {}]   ;;  %s3463_s3 = inlined_call_operand.vmem [shape: f32[9,4,8], index: 3, kind: input, shape index: {}]   ;;  %s3464_s4 = inlined_call_operand.vmem [shape: f32[1,8], index: 4, kind: input, shape index: {}]   ;;  %s3465_s5 = inlined_call_operand.vmem [shape: f32[2,64,8], index: 5, kind: output, shape index: {}]  }
   0x1   :  { %s2846_s20 = smov 0  }
   0x2 LB: > { %s27_s1 = sadd.s32 1, %s2805_s19  ;;  %p2387_p1 = scmp.ge.s32.totalorder %s2809_s20, 2  ;;  %s2809_s20 = sphi %s2846_s20, %s15_s20   ;;  %s2805_s19 = sphi %s2844_s19, %s3581_s19   ;;  %s2801_s18 = sphi %s2842_s18, %s3580_s18  }
   0x3   : > { %p29_p0 = scmp.ge.s32.totalorder %s27_s1, 2  ;;  %p2394_p2 = scmp.ge.s32.totalorder %s2809_s20, 1 }
   0x4   : > { %p352_p3 = scmp.lt.s32.totalorder %s2809_s20, 3 }
   0x5   : > { %s3583_s1 = smov (%p29_p0, %s27_s1), 0 }
   0x6   : > { %p353_p4 = pnand %p2394_p2, %p352_p3 }
   0x7   : > { %p411_p5 = scmp.lt.s32.totalorder (!%p353_p4), %s2801_s18, 1 }
   0x8   : > { %356 = sbr.rel (%p353_p4) target bundleno = 341 (0x155), region = 108 }
   0xd   : > { %v691_v0 = vld [vmem:[%s3463_s3] sm:$0xf]  ;;  %vm3475_vm0 = vcmask 1043456   ;;  %vm3466_vm1 = vcmask 31744   ;;  %v538_v1 = vlaneseq  ;;  %v2811_v2 = vmov 0.0   ;;  %s3585_s18 = smov (!%p411_p5, %s2801_s18), 1 }
   0xe   : > { %2736 = vmatprep.subr.msk.mxu1 %vm3475_vm0, %v691_v0  ;;  %2610 = vmatprep.subr.msk.mxu0 %vm3475_vm0, %v691_v0  ;;  %521 = vst.msk [vmem:[#allocation2 + $0x8] sm:$0xff] %vm3466_vm1, %v2811_v2  ;;  %537 = vst.msk [vmem:[#allocation2 + $0x50] sm:$0xff] %vm3466_vm1, %v2811_v2  ;;  %v2871_v3 = vld [vmem:[%s3463_s3 + $0x4] sm:$0xf]  ;;  %v2876_v4 = vld [vmem:[%s3463_s3 + $0x8] sm:$0xf] }
   0xf   : > { %2737 = vmatpush3.msk.msra.mxu1 %vm3475_vm0, %v691_v0  ;;  %2611 = vmatpush3.msk.msra.mxu0 %vm3475_vm0, %v691_v0  ;;  %v2880_v5 = vshrl.u32 %v538_v1, 7  ;;  %s2526_s26 = sshll.u32 %s3585_s18, 8  ;;  %s2527_s21 = sshll.u32 %s3585_s18, 6 }
  0x10   : > { %2624 = vmatprep.subr.msk.mxu1 %vm3475_vm0, %v2871_v3  ;;  %2638 = vmatprep.subr.msk.mxu0 %vm3475_vm0, %v2876_v4  ;;  %s2893_s29 = scalar_lea.vmem %s3460_s0, %s2526_s26  ;;  %s3430_s24 = scalar_lea.vmem %s3465_s5, %s2527_s21 }
  0x11   : > { %v551_v6 = vand.u32 7, %v2880_v5  ;;  %v440_v8 = vld [vmem:[%s2893_s29 + $0x10] sm:$0xff]  ;;  %v441_v9 = vld [vmem:[%s2893_s29 + $0x18] sm:$0xff]  ;;  %v438_v22 = vld [vmem:[%s2893_s29] sm:$0xff]  ;;  %v2916_v25 = vadd.s32 32, %v2880_v5  ;;  %v2925_v38 = vadd.s32 8, %v2880_v5 }
  0x12   : > { %v2403_v10 = vld [vmem:[%s2893_s29 + $0x50] sm:$0xff]  ;;  %v2404_v11 = vld [vmem:[%s2893_s29 + $0x58] sm:$0xff]  ;;  %v439_v23 = vld [vmem:[%s2893_s29 + $0x8] sm:$0xff]  ;;  %v2933_v44 = vadd.s32 40, %v2880_v5  ;;  %v2936_v45 = vadd.s32 16, %v2880_v5  ;;  %v2946_v58 = vadd.s32 24, %v2880_v5 }
  0x13   : > { %vm2897_vm2 = vcmp.ne.s32.totalorder %v551_v6, 0  ;;  %v457_v12 = vmax.f32 %v440_v8, %v2403_v10  ;;  %v2411_v13 = vld [vmem:[%s2893_s29 + $0x90] sm:$0xff]  ;;  %v2412_v14 = vld [vmem:[%s2893_s29 + $0x98] sm:$0xff]  ;;  %v458_v16 = vmax.f32 %v441_v9, %v2404_v11  ;;  %v2401_v24 = vld [vmem:[%s2893_s29 + $0x40] sm:$0xff]  ;;  %v579_v49 = vand.u32 7, %v2916_v25 }
  0x14   : > { %v2419_v17 = vld [vmem:[%s2893_s29 + $0xd0] sm:$0xff]  ;;  %v2420_v18 = vld [vmem:[%s2893_s29 + $0xd8] sm:$0xff]  ;;  %v2402_v26 = vld [vmem:[%s2893_s29 + $0x48] sm:$0xff]  ;;  %v455_v27 = vmax.f32 %v438_v22, %v2401_v24  ;;  %v2953_v62 = vadd.s32 48, %v2880_v5  ;;  %v2956_v0 = vadd.s32 56, %v2880_v5  ;;  %v558_v9 = vand.u32 7, %v2925_v38 }
  0x15   : > { %v659_v15 = vld [vmem:[#allocation2 + $0x7] sm:$0xff]  ;;  %v483_v20 = vmax.f32 %v2411_v13, %v2419_v17  ;;  %v484_v21 = vmax.f32 %v2412_v14, %v2420_v18  ;;  %v456_v32 = vmax.f32 %v439_v23, %v2402_v26  ;;  %v444_v54 = vld [vmem:[%s2893_s29 + $0x30] sm:$0xff]  ;;  %v445_v1 = vld [vmem:[%s2893_s29 + $0x38] sm:$0xff]  ;;  %v565_v10 = vand.u32 7, %v2936_v45 }
  0x16   : > { %v683_v19 = vsel %vm2897_vm2, %v659_v15, 0.0  ;;  %v2409_v28 = vld [vmem:[%s2893_s29 + $0x80] sm:$0xff]  ;;  %v2410_v29 = vld [vmem:[%s2893_s29 + $0x88] sm:$0xff]  ;;  %v2407_v55 = vld [vmem:[%s2893_s29 + $0x70] sm:$0xff]  ;;  %vm2967_vm3 = vcmp.ne.s32.totalorder %v579_v49, 0  ;;  %v586_v15 = vand.u32 7, %v2933_v44 }
  0x17   : > { %2612 = vmatprep.mubr.msk.f32.mxu0 %vm3466_vm1, %v683_v19  ;;  %v491_v30 = vmax.f32 %v457_v12, %v483_v20  ;;  %v492_v31 = vmax.f32 %v458_v16, %v484_v21  ;;  %v2417_v33 = vld [vmem:[%s2893_s29 + $0xc0] sm:$0xff]  ;;  %v2418_v34 = vld [vmem:[%s2893_s29 + $0xc8] sm:$0xff]  ;;  %v461_v59 = vmax.f32 %v444_v54, %v2407_v55  ;;  %v2415_v60 = vld [vmem:[%s2893_s29 + $0xb0] sm:$0xff]  ;;  %v572_v18 = vand.u32 7, %v2946_v58 }
  0x18   : > { %v442_v35 = vld [vmem:[%s2893_s29 + $0x20] sm:$0xff]  ;;  %v481_v36 = vmax.f32 %v2409_v28, %v2417_v33  ;;  %v482_v37 = vmax.f32 %v2410_v29, %v2418_v34  ;;  %v443_v46 = vld [vmem:[%s2893_s29 + $0x28] sm:$0xff]  ;;  %v2423_v61 = vld [vmem:[%s2893_s29 + $0xf0] sm:$0xff]  ;;  %v593_v20 = vand.u32 7, %v2953_v62  ;;  %vm2981_vm4 = vcmp.ne.s32.totalorder %v558_v9, 0 }
  0x19   : > { %v2405_v39 = vld [vmem:[%s2893_s29 + $0x60] sm:$0xff]  ;;  %500 = vst.msk [vmem:[#allocation2 + $0x20] sm:$0xff] %vm3466_vm1, %v491_v30  ;;  %501 = vst.msk [vmem:[#allocation2 + $0x28] sm:$0xff] %vm3466_vm1, %v492_v31  ;;  %v2406_v47 = vld [vmem:[%s2893_s29 + $0x68] sm:$0xff]  ;;  %v487_v63 = vmax.f32 %v2415_v60, %v2423_v61  ;;  %vm2985_vm5 = vcmp.ne.s32.totalorder %v565_v10, 0  ;;  %v600_v26 = vand.u32 7, %v2956_v0 }
  0x1a   : > { %v2413_v40 = vld [vmem:[%s2893_s29 + $0xa0] sm:$0xff]  ;;  %v459_v42 = vmax.f32 %v442_v35, %v2405_v39  ;;  %v2414_v48 = vld [vmem:[%s2893_s29 + $0xa8] sm:$0xff]  ;;  %v489_v50 = vmax.f32 %v455_v27, %v481_v36  ;;  %v490_v51 = vmax.f32 %v456_v32, %v482_v37  ;;  %v460_v52 = vmax.f32 %v443_v46, %v2406_v47  ;;  %v2408_v2 = vld [vmem:[%s2893_s29 + $0x78] sm:$0xff] }
  0x1b   : > { %v2421_v41 = vld [vmem:[%s2893_s29 + $0xe0] sm:$0xff]  ;;  %v2422_v53 = vld [vmem:[%s2893_s29 + $0xe8] sm:$0xff]  ;;  %v2416_v8 = vld [vmem:[%s2893_s29 + $0xb8] sm:$0xff]  ;;  %v462_v12 = vmax.f32 %v445_v1, %v2408_v2  ;;  %v495_v16 = vmax.f32 %v461_v59, %v487_v63  ;;  %vm2993_vm6 = vcmp.ne.s32.totalorder %v586_v15, 0  ;;  %vm3004_vm7 = vcmp.ne.s32.totalorder %v572_v18, 0 }
  0x1c   : > { %v485_v43 = vmax.f32 %v2413_v40, %v2421_v41  ;;  %v486_v57 = vmax.f32 %v2414_v48, %v2422_v53  ;;  %498 = vst.msk [vmem:[#allocation2 + $0x10] sm:$0xff] %vm3466_vm1, %v489_v50  ;;  %499 = vst.msk [vmem:[#allocation2 + $0x18] sm:$0xff] %vm3466_vm1, %v490_v51  ;;  %v2424_v13 = vld [vmem:[%s2893_s29 + $0xf8] sm:$0xff]  ;;  %v3493_v31 = vmov 0  ;;  %vm3018_vm8 = vcmp.ne.s32.totalorder %v593_v20, 0  ;;  %v834_v48 = vld [vmem:[#allocation2 + $0x8] sm:$0xff] }
  0x1d   : > { %v488_v17 = vmax.f32 %v2416_v8, %v2424_v13  ;;  %504 = vst.msk [vmem:[#allocation2 + $0x40] sm:$0xff] %vm3466_vm1, %v495_v16  ;;  %v3494_v31 = vsel %vm3004_vm7, 4294967295, %v3493_v31  ;;  %vm3024_vm9 = vcmp.ne.s32.totalorder %v551_v6, 7  ;;  %vm3034_vm10 = vcmp.ne.s32.totalorder %v600_v26, 0  ;;  %v2460_v5 = vld [vmem:[%s3463_s3 + $0xc] sm:$0xf] }
  0x1e   : > { %v493_v56 = vmax.f32 %v459_v42, %v485_v43  ;;  %v494_v11 = vmax.f32 %v460_v52, %v486_v57  ;;  %v2470_v41 = vld [vmem:[%s3463_s3 + $0x10] sm:$0xf]  ;;  %vm3051_vm11 = vcmp.ne.s32.totalorder %v558_v9, 7  ;;  %v3501_v42 = vmov 0  ;;  %v2480_v59 = vld [vmem:[%s3463_s3 + $0x14] sm:$0xf] }
  0x1f   : > { %v496_v21 = vmax.f32 %v462_v12, %v488_v17  ;;  %v3502_v42 = vsel %vm3051_vm11, 4294967295, %v3501_v42  ;;  %vm3073_vm12 = vcmp.ne.s32.totalorder %v565_v10, 7  ;;  %v3503_v50 = vmov 0 }
  0x20   : > { %502 = vst.msk [vmem:[#allocation2 + $0x30] sm:$0xff] %vm3466_vm1, %v493_v56  ;;  %503 = vst.msk [vmem:[#allocation2 + $0x38] sm:$0xff] %vm3466_vm1, %v494_v11  ;;  %v2974_v19 = vld [vmem:[#allocation2 + $0x27] sm:$0xff]  ;;  %v3504_v50 = vsel %vm3073_vm12, 4294967295, %v3503_v50  ;;  %vm3090_vm13 = vcmp.ne.s32.totalorder %v572_v18, 7  ;;  %v3505_v54 = vmov 0 }
  0x21   : > { %v687_v22 = vsel %vm2967_vm3, %v2974_v19, 0.0  ;;  %505 = vst.msk [vmem:[#allocation2 + $0x48] sm:$0xff] %vm3466_vm1, %v496_v21  ;;  %v3506_v54 = vsel %vm3090_vm13, 4294967295, %v3505_v54  ;;  %v3094_v55 = vld [vmem:[#allocation2 + $0x21] sm:$0xff]  ;;  %vm3100_vm14 = vcmp.ne.s32.totalorder %v579_v49, 7  ;;  %v3507_v57 = vmov 0 }
  0x22   : > { %2618 = vmatprep.mubr.msk.f32.mxu1 %vm3466_vm1, %v687_v22  ;;  %v3508_v57 = vsel %vm3100_vm14, 4294967295, %v3507_v57  ;;  %v1027_v25 = vsel %vm3090_vm13, %v3094_v55, 0.0  ;;  %v2490_v49 = vld [vmem:[%s3463_s3 + $0x18] sm:$0xf]  ;;  %v3120_v60 = vld [vmem:[#allocation2 + $0x20] sm:$0xff]  ;;  %vm3128_vm15 = vcmp.ne.s32.totalorder %v586_v15, 7 }
  0x23   : > { %v2998_v28 = vld [vmem:[#allocation2 + $0xf] sm:$0xff]  ;;  %v3000_v29 = vld [vmem:[#allocation2 + $0x17] sm:$0xff]  ;;  %v3002_v30 = vld [vmem:[#allocation2 + $0x1f] sm:$0xff]  ;;  %v3509_v63 = vmov 0  ;;  %v3511_v8 = vmov 0  ;;  %v3517_v11 = vmov 0 }
  0x24   : > { %v684_v32 = vsel %vm2981_vm4, %v2998_v28, 0.0  ;;  %v685_v34 = vsel %vm2985_vm5, %v3000_v29, 0.0  ;;  %v1000_v6 = vld [vmem:[#allocation2 + $0x9] sm:$0xff]  ;;  %v686_v40 = vsel %vm3004_vm7, %v3002_v30, 0.0  ;;  %v3066_v47 = vld [vmem:[#allocation2 + $0x11] sm:$0xff]  ;;  %v3077_v51 = vld [vmem:[#allocation2 + $0x19] sm:$0xff] }
  0x25   : > { %2613 = vmatmul.mubr.msk.f32.vlgmr.msra.gmra.mxu0 %vm3466_vm1, %v684_v32  ;;  %v1024_v46 = vsel %vm3024_vm9, %v1000_v6, 0.0  ;;  %v835_v52 = vld [vmem:[#allocation2 + $0x10] sm:$0xff]  ;;  %v1026_v53 = vsel %vm3073_vm12, %v3077_v51, 0.0  ;;  %v3096_v56 = vld [vmem:[#allocation2 + $0x18] sm:$0xff]  ;;  %v3510_v63 = vsel %vm3128_vm15, 4294967295, %v3509_v63  ;;  %v3134_v2 = vld [vmem:[#allocation2 + $0x28] sm:$0xff] }
  0x26   : > { %2615 = vmatprep.mubr.msk.f32.mxu0 %vm3466_vm1, %v685_v34  ;;  %2639 = vmatpush3.msk.msra.mxu0 %vm3475_vm0, %v2876_v4  ;;  %v1025_v4 = vsel %vm3051_vm11, %v3066_v47, 0.0  ;;  %v3180_v0 = vld [vmem:[#allocation2 + $0x40] sm:$0xff]  ;;  %v1198_v16 = vsel %vm2897_vm2, %v2998_v28, 0.0  ;;  %v1199_v17 = vsel %vm2981_vm4, %v3000_v29, 0.0  ;;  %v1200_v18 = vsel %vm2985_vm5, %v3002_v30, 0.0 }
  0x27   : > { %v3011_v33 = vld [vmem:[#allocation2 + $0x2f] sm:$0xff]  ;;  %v3043_v39 = vld [vmem:[#allocation2 + $0x37] sm:$0xff]  ;;  %v3060_v45 = vld [vmem:[#allocation2 + $0x3f] sm:$0xff]  ;;  %2666 = vmatprep.subr.msk.mxu0 %vm3475_vm0, %v2470_v41  ;;  %v1201_v22 = vsel %vm3004_vm7, %v2974_v19, 0.0  ;;  %v1712_v6 = vsel %vm2897_vm2, %v3000_v29, 0.0  ;;  %vm3544_vm2 = vnez %v3502_v42  ;;  %v1714_v29 = vsel %vm2985_vm5, %v2974_v19, 0.0 }
  0x28   : > { %v688_v37 = vsel %vm2993_vm6, %v3011_v33, 0.0  ;;  %v689_v43 = vsel %vm3018_vm8, %v3043_v39, 0.0  ;;  %v3104_v58 = vld [vmem:[#allocation2 + $0x29] sm:$0xff]  ;;  %v3132_v1 = vld [vmem:[#allocation2 + $0x31] sm:$0xff]  ;;  %v3143_v9 = vld [vmem:[#allocation2 + $0x39] sm:$0xff]  ;;  %v1203_v28 = vsel %vm2993_vm6, %v3043_v39, 0.0 }
  0x29   : > { %2619 = vmatmul.mubr.msk.f32.vlgmr.msra.gmra.mxu1 %vm3466_vm1, %v688_v37  ;;  %2616 = vmatmul.mubr.msk.f32.gmra.mxu0 %vm3466_vm1, %v686_v40  ;;  %v1028_v61 = vsel %vm3100_vm14, %v3104_v58, 0.0  ;;  %vm3513_vm14 = vcmask 31744   ;;  %v1029_v44 = vsel %vm3128_vm15, %v3132_v1, 0.0  ;;  %v3156_v62 = vld [vmem:[#allocation2 + $0x30] sm:$0xff]  ;;  %v3167_v12 = vld [vmem:[#allocation2 + $0x41] sm:$0xff]  ;;  %v3169_v13 = vld [vmem:[#allocation2 + $0x38] sm:$0xff] }
  0x2a   : > { %2625 = vmatpush3.msk.msra.mxu1 %vm3475_vm0, %v2871_v3  ;;  %2621 = vmatprep.mubr.msk.f32.mxu1 %vm3466_vm1, %v689_v43  ;;  %v690_v3 = vsel %vm3034_vm10, %v3060_v45, 0.0  ;;  %vm3514_vm13 = vmmov %vm3513_vm14  ;;  %v2510_v21 = vld [vmem:[%s3463_s3 + $0x20] sm:$0xf]  ;;  %v1204_v32 = vsel %vm3018_vm8, %v3060_v45, 0.0  ;;  %v1197_v34 = vld [vmem:[#allocation2 + $0x47] sm:$0xff]  ;;  %v1538_v40 = vsel %vm3024_vm9, %v3066_v47, 0.0 }
  0x2b   : > { %2652 = vmatprep.subr.msk.mxu1 %vm3475_vm0, %v2460_v5  ;;  %2640 = vmatprep.mubr.msk.f32.mxu0 %vm3466_vm1, %v1024_v46  ;;  %vm3515_vm12 = vmmov %vm3514_vm13  ;;  %v3235_v37 = vld [vmem:[#allocation2 + $0x48] sm:$0xff]  ;;  %v1539_v7 = vsel %vm3544_vm2, %v3077_v51, 0.0  ;;  %vm3551_vm5 = vcmask 1043456   ;;  %v1716_v24 = vsel %vm2967_vm3, %v3043_v39, 0.0  ;;  %v2053_v38 = vsel %vm3544_vm2, %v3094_v55, 0.0 }
  0x2c   : > { %vm3516_vm11 = vmmov %vm3515_vm12  ;;  %v1711_v39 = vld [vmem:[#allocation2 + $0x4f] sm:$0xff] }
  0x2d   : > { %2622 = vmatmul.mubr.msk.f32.gmra.mxu1 %vm3466_vm1, %v690_v3  ;;  %2641 = vmatmul.mubr.msk.f32.vlgmr.msra.gmra.mxu0 %vm3466_vm1, %v1025_v4  ;;  %v1537_v47 = vld [vmem:[#allocation2 + $0x49] sm:$0xff]  ;;  %v1719_v27 = vsel %vm3034_vm10, %v1711_v39, 0.0 }
  0x2e   : > { %2626 = vmatprep.mubr.msk.f32.mxu1 %vm3466_vm1, %v834_v48  ;;  %2643 = vmatprep.mubr.msk.f32.mxu0 %vm3466_vm1, %v1026_v53 }
  0x2f   : > { %2667 = vmatpush3.msk.msra.mxu0 %vm3475_vm0, %v2470_v41  ;;  %v1713_v41 = vsel %vm2981_vm4, %v3002_v30, 0.0 }
  0x30   : > { %2694 = vmatprep.subr.msk.mxu0 %vm3475_vm0, %v2490_v49 }
  0x31   : > { %2627 = vmatmul.mubr.msk.f32.vlgmr.msra.gmra.mxu1 %vm3466_vm1, %v835_v52  ;;  %2644 = vmatmul.mubr.msk.f32.gmra.mxu0 %vm3513_vm14, %v1027_v25  ;;  %vm3163_vm14 = vcmp.ne.s32.totalorder %v600_v26, 7  ;;  %v1202_v26 = vsel %vm2967_vm3, %v3011_v33, 0.0  ;;  %vm3557_vm3 = vnez %v3510_v63 }
  0x32   : > { %2629 = vmatprep.mubr.msk.f32.mxu1 %vm3466_vm1, %v3096_v56  ;;  %2653 = vmatpush3.msk.msra.mxu1 %vm3475_vm0, %v2460_v5  ;;  %vm3139_vm1 = vcmp.ne.s32.totalorder %v593_v20, 7  ;;  %v3518_v11 = vsel %vm3163_vm14, 4294967295, %v3517_v11  ;;  %v1031_v15 = vsel %vm3163_vm14, %v3167_v12, 0.0  ;;  %v2500_v20 = vld [vmem:[%s3463_s3 + $0x1c] sm:$0xf]  ;;  %v1205_v5 = vsel %vm3034_vm10, %v1197_v34, 0.0 }
  0x33   : > { %v3512_v8 = vsel %vm3139_vm1, 4294967295, %v3511_v8  ;;  %2680 = vmatprep.subr.msk.mxu1 %vm3475_vm0, %v2480_v59  ;;  %2646 = vmatprep.mubr.msk.f32.mxu0 %vm3515_vm12, %v1028_v61  ;;  %v1030_v10 = vsel %vm3139_vm1, %v3143_v9, 0.0  ;;  %vm3519_vm12 = vmmov %vm3516_vm11  ;;  %v1543_v14 = vsel %vm3557_vm3, %v3143_v9, 0.0  ;;  %v2057_v48 = vsel %vm3557_vm3, %v3167_v12, 0.0 }
  0x34   : > { %vm3521_vm0 = vmmov %vm3516_vm11 }
  0x35   : > { %2630 = vmatmul.mubr.msk.f32.gmra.mxu1 %vm3514_vm13, %v3120_v60  ;;  %2647 = vmatmul.mubr.msk.f32.gmra.mxu0 %vm3519_vm12, %v1029_v44  ;;  %vm3520_vm13 = vmmov %vm3516_vm11 }
  0x36   : > { %2632 = vmatprep.mubr.msk.f32.mxu1 %vm3516_vm11, %v3134_v2  ;;  %2649 = vmatprep.mubr.msk.f32.mxu0 %vm3520_vm13, %v1030_v10  ;;  %vm3522_vm1 = vmmov %vm3521_vm0 }
  0x37   : > { %vm3523_vm12 = vmmov %vm3521_vm0 }
  0x38   : > { %vm3525_vm13 = vmmov %vm3521_vm0 }
  0x39   : > { %2633 = vmatmul.mubr.msk.f32.gmra.mxu1 %vm3516_vm11, %v3156_v62  ;;  %2650 = vmatmul.mubr.msk.f32.gmra.mxu0 %vm3522_vm1, %v1031_v15  ;;  %vm3524_vm11 = vmmov %vm3521_vm0 }
  0x3a   : > { %2635 = vmatprep.mubr.msk.f32.mxu1 %vm3521_vm0, %v3169_v13  ;;  %2668 = vmatprep.mubr.msk.f32.mxu0 %vm3524_vm11, %v835_v52  ;;  %vm3526_vm1 = vmmov %vm3521_vm0  ;;  %v1885_v52 = vld [vmem:[#allocation2 + $0x50] sm:$0xff] }
  0x3b   : > { %vm3528_vm11 = vmmov %vm3521_vm0 }
  0x3c   : > { %vm3534_vm15 = vmmov %vm3528_vm11 }
  0x3d   : > { %2636 = vmatmul.mubr.msk.f32.gmra.mxu1 %vm3523_vm12, %v3180_v0  ;;  %2669 = vmatmul.mubr.msk.f32.vlgmr.msra.gmra.mxu0 %vm3521_vm0, %v3096_v56  ;;  %vm3527_vm12 = vmmov %vm3521_vm0 }
  0x3e   : > { %2654 = vmatprep.mubr.msk.f32.mxu1 %vm3525_vm13, %v1198_v16  ;;  %2671 = vmatprep.mubr.msk.f32.mxu0 %vm3527_vm12, %v3120_v60  ;;  %vm3529_vm13 = vcmask 1043456   ;;  %vm3532_vm12 = vmmov %vm3528_vm11 }
  0x3f   : > { %vm3530_vm0 = vmmov %vm3529_vm13 }
  0x40   : > { %2695 = vmatpush3.msk.msra.mxu0 %vm3530_vm0, %v2490_v49  ;;  %vm3533_vm14 = vmmov %vm3530_vm0 }
  0x41   : > { %2655 = vmatmul.mubr.msk.f32.vlgmr.msra.gmra.mxu1 %vm3526_vm1, %v1199_v17  ;;  %vm3531_vm1 = vmmov %vm3530_vm0  ;;  %2672 = vmatmul.mubr.msk.f32.gmra.mxu0 %vm3532_vm12, %v3134_v2 }
  0x42   : > { %2657 = vmatprep.mubr.msk.f32.mxu1 %vm3528_vm11, %v1200_v18  ;;  %2681 = vmatpush3.msk.msra.mxu1 %vm3529_vm13, %v2480_v59  ;;  %vm3535_vm7 = vmmov %vm3528_vm11 }
  0x43   : > { %2708 = vmatprep.subr.msk.mxu1 %vm3531_vm1, %v2500_v20  ;;  %2722 = vmatprep.subr.msk.mxu0 %vm3533_vm14, %v2510_v21  ;;  %vm3536_vm13 = vmmov %vm3535_vm7 }
  0x44   : > { %2674 = vmatprep.mubr.msk.f32.mxu0 %vm3534_vm15, %v3156_v62  ;;  %vm3537_vm14 = vmmov %vm3535_vm7 }
  0x45   : > { %2658 = vmatmul.mubr.msk.f32.gmra.mxu1 %vm3528_vm11, %v1201_v22  ;;  %2675 = vmatmul.mubr.msk.f32.gmra.mxu0 %vm3536_vm13, %v3169_v13  ;;  %vm3538_vm0 = vmmov %vm3535_vm7  ;;  %vm3545_vm13 = vnez %v3504_v50 }
  0x46   : > { %2660 = vmatprep.mubr.msk.f32.mxu1 %vm3535_vm7, %v1202_v26  ;;  %2677 = vmatprep.mubr.msk.f32.mxu0 %vm3538_vm0, %v3180_v0  ;;  %vm3539_vm7 = vmmov %vm3538_vm0  ;;  %v1540_v43 = vsel %vm3545_vm13, %v3094_v55, 0.0  ;;  %v2054_v3 = vsel %vm3545_vm13, %v3104_v58, 0.0 }
  0x47   : > { %vm3540_vm15 = vmmov %vm3538_vm0 }
  0x48   : > { %vm3541_vm1 = vmmov %vm3538_vm0 }
  0x49   : > { %2661 = vmatmul.mubr.msk.f32.gmra.mxu1 %vm3537_vm14, %v1203_v28  ;;  %2678 = vmatmul.mubr.msk.f32.gmra.mxu0 %vm3540_vm15, %v3235_v37  ;;  %vm3542_vm12 = vmmov %vm3538_vm0 }
  0x4a   : > { %2663 = vmatprep.mubr.msk.f32.mxu1 %vm3539_vm7, %v1204_v32  ;;  %2696 = vmatprep.mubr.msk.f32.mxu0 %vm3542_vm12, %v1712_v6  ;;  %vm3543_vm11 = vmmov %vm3538_vm0  ;;  %vm3548_vm7 = vnez %v3494_v31  ;;  %vm3552_vm12 = vnez %v3508_v57  ;;  %v1717_v31 = vsel %vm2993_vm6, %v3060_v45, 0.0  ;;  %v2052_v45 = vsel %vm3024_vm9, %v3077_v51, 0.0  ;;  %v2051_v51 = vld [vmem:[#allocation2 + $0x51] sm:$0xff] }
  0x4b   : > { %vm3546_vm14 = vmmov %vm3538_vm0  ;;  %v1715_v23 = vsel %vm3548_vm7, %v3011_v33, 0.0  ;;  %v1542_v30 = vsel %vm3552_vm12, %v3132_v1, 0.0  ;;  %v1718_v33 = vsel %vm3018_vm8, %v1197_v34, 0.0  ;;  %v2056_v42 = vsel %vm3552_vm12, %v3143_v9, 0.0 }
  0x4c   : > { %vm3547_vm4 = vmmov %vm3538_vm0 }
  0x4d   : > { %2664 = vmatmul.mubr.msk.f32.gmra.mxu1 %vm3541_vm1, %v1205_v5  ;;  %2697 = vmatmul.mubr.msk.f32.vlgmr.msra.gmra.mxu0 %vm3546_vm14, %v1713_v41  ;;  %vm3549_vm15 = vmmov %vm3538_vm0  ;;  %vm3550_vm1 = vnez %v3506_v54 }
  0x4e   : > { %2682 = vmatprep.mubr.msk.f32.mxu1 %vm3543_vm11, %v1538_v40  ;;  %2699 = vmatprep.mubr.msk.f32.mxu0 %vm3538_vm0, %v1714_v29  ;;  %v1541_v19 = vsel %vm3550_vm1, %v3104_v58, 0.0  ;;  %vm3553_vm11 = vmmov %vm3551_vm5  ;;  %v2055_v36 = vsel %vm3550_vm1, %v3132_v1, 0.0 }
  0x4f   : > { %2723 = vmatpush3.msk.msra.mxu0 %vm3553_vm11, %v2510_v21  ;;  %vm3554_vm14 = vmmov %vm3538_vm0 }
  0x50   : > { %vm3556_vm7 = vmmov %vm3538_vm0 }
  0x51   : > { %2683 = vmatmul.mubr.msk.f32.vlgmr.msra.gmra.mxu1 %vm3547_vm4, %v1539_v7  ;;  %2700 = vmatmul.mubr.msk.f32.gmra.mxu0 %vm3554_vm14, %v1715_v23  ;;  %vm3555_vm4 = vmmov %vm3538_vm0 }
  0x52   : > { %2685 = vmatprep.mubr.msk.f32.mxu1 %vm3549_vm15, %v1540_v43  ;;  %2709 = vmatpush3.msk.msra.mxu1 %vm3551_vm5, %v2500_v20  ;;  %vm3558_vm15 = vnez %v3512_v8  ;;  %vm3559_vm5 = vmmov %vm3538_vm0 }
  0x53   : > { %2702 = vmatprep.mubr.msk.f32.mxu0 %vm3538_vm0, %v1716_v24  ;;  %v1544_v46 = vsel %vm3558_vm15, %v3167_v12, 0.0  ;;  %vm3560_vm11 = vmmov %vm3538_vm0  ;;  %v2058_v50 = vsel %vm3558_vm15, %v1537_v47, 0.0  ;;  %vm825_vm15 = vcmask 64512  }
  0x54   : > { %vm3561_vm6 = vmmov %vm3538_vm0 }
  0x55   : > { %2686 = vmatmul.mubr.msk.f32.gmra.mxu1 %vm3555_vm4, %v1541_v19  ;;  %2703 = vmatmul.mubr.msk.f32.gmra.mxu0 %vm3559_vm5, %v1717_v31  ;;  %vm3562_vm14 = vmmov %vm3538_vm0  ;;  %vm3563_vm4 = vnez %v3518_v11 }
  0x56   : > { %2688 = vmatprep.mubr.msk.f32.mxu1 %vm3556_vm7, %v1542_v30  ;;  %2705 = vmatprep.mubr.msk.f32.mxu0 %vm3561_vm6, %v1718_v33  ;;  %v1545_v35 = vsel %vm3563_vm4, %v1537_v47, 0.0  ;;  %vm3564_vm8 = vmmov %vm3538_vm0  ;;  %v2059_v4 = vsel %vm3563_vm4, %v2051_v51, 0.0 }
  0x57   : > { %vm3565_vm7 = vmmov %vm3538_vm0 }
  0x58   : > { %vm3566_vm10 = vmmov %vm3538_vm0 }
  0x59   : > { %2689 = vmatmul.mubr.msk.f32.gmra.mxu1 %vm3560_vm11, %v1543_v14  ;;  %2706 = vmatmul.mubr.msk.f32.gmra.mxu0 %vm3564_vm8, %v1719_v27  ;;  %vm3567_vm5 = vmmov %vm3538_vm0 }
  0x5a   : > { %2691 = vmatprep.mubr.msk.f32.mxu1 %vm3562_vm14, %v1544_v46  ;;  %2724 = vmatprep.mubr.msk.f32.mxu0 %vm3565_vm7, %v2052_v45  ;;  %vm3568_vm9 = vmmov %vm3538_vm0 }
  0x5b   : > { %vm3569_vm11 = vmmov %vm3538_vm0 }
  0x5c   : > { %vm3570_vm2 = vmmov %vm3538_vm0 }
  0x5d   : > { %2692 = vmatmul.mubr.msk.f32.gmra.mxu1 %vm3538_vm0, %v1545_v35  ;;  %2725 = vmatmul.mubr.msk.f32.vlgmr.msra.gmra.mxu0 %vm3567_vm5, %v2053_v38  ;;  %vm3571_vm6 = vmmov %vm3538_vm0 }
  0x5e   : > { %2710 = vmatprep.mubr.msk.f32.mxu1 %vm3566_vm10, %v3096_v56  ;;  %2727 = vmatprep.mubr.msk.f32.mxu0 %vm3569_vm11, %v2054_v3  ;;  %vm3572_vm13 = vmmov %vm3538_vm0 }
  0x5f   : > { %vm3573_vm14 = vmmov %vm3538_vm0 }
  0x60   : > { %vm3574_vm1 = vmmov %vm3538_vm0 }
  0x61   : > { %2711 = vmatmul.mubr.msk.f32.vlgmr.msra.gmra.mxu1 %vm3568_vm9, %v3120_v60  ;;  %2728 = vmatmul.mubr.msk.f32.gmra.mxu0 %vm3571_vm6, %v2055_v36  ;;  %vm3575_vm8 = vmmov %vm3538_vm0 }
  0x62   : > { %2713 = vmatprep.mubr.msk.f32.mxu1 %vm3570_vm2, %v3134_v2  ;;  %2730 = vmatprep.mubr.msk.f32.mxu0 %vm3573_vm14, %v2056_v42  ;;  %vm3576_vm12 = vmmov %vm3538_vm0 }
  0x63   : > { %vm3577_vm7 = vmmov %vm3538_vm0 }
  0x64   : > { %vm3578_vm3 = vmmov %vm3538_vm0 }
  0x65   : > { %2714 = vmatmul.mubr.msk.f32.gmra.mxu1 %vm3572_vm13, %v3156_v62  ;;  %2731 = vmatmul.mubr.msk.f32.gmra.mxu0 %vm3575_vm8, %v2057_v48  ;;  %vm3579_vm10 = vmmov %vm3538_vm0 }
  0x66   : > { %2716 = vmatprep.mubr.msk.f32.mxu1 %vm3574_vm1, %v3169_v13  ;;  %2733 = vmatprep.mubr.msk.f32.mxu0 %vm3538_vm0, %v2058_v50 }
  0x69   : > { %2717 = vmatmul.mubr.msk.f32.gmra.mxu1 %vm3576_vm12, %v3180_v0  ;;  %2734 = vmatmul.mubr.msk.f32.gmra.mxu0 %vm3578_vm3, %v2059_v4 }
  0x6a   : > { %2719 = vmatprep.mubr.msk.f32.mxu1 %vm3577_vm7, %v3235_v37 }
  0x6d   : > { %2720 = vmatmul.mubr.msk.f32.gmra.mxu1 %vm3579_vm10, %v1885_v52 }
  0xe5   : > { %v2614_v53 = vpop.f32.mrf.mxu0 }
  0xe6   : > { %827 = vst.msk [vmem:[#allocation3 + $0x8] sm:$0xff] %vm825_vm15, %v2614_v53 }
  0xe7   : > { %v786_v55 = vpop.f32.mrf.mxu0 }
  0xe8   : > { %826 = vst.msk [vmem:[#allocation3] sm:$0xff] %vm825_vm15, %v786_v55 }
  0xe9   : > { %v2620_v54 = vpop.f32.mrf.mxu1  ;;  %v2617_v57 = vpop.f32.mrf.mxu0 }
  0xea   : > { %831 = vst.msk [vmem:[#allocation3 + $0x28] sm:$0xff] %vm825_vm15, %v2620_v54  ;;  %829 = vst.msk [vmem:[#allocation3 + $0x18] sm:$0xff] %vm825_vm15, %v2617_v57 }
  0xeb   : > { %v806_v56 = vpop.f32.mrf.mxu1  ;;  %v796_v59 = vpop.f32.mrf.mxu0 }
  0xec   : > { %830 = vst.msk [vmem:[#allocation3 + $0x20] sm:$0xff] %vm825_vm15, %v806_v56  ;;  %828 = vst.msk [vmem:[#allocation3 + $0x10] sm:$0xff] %vm825_vm15, %v796_v59 }
  0xed   : > { %v2623_v58 = vpop.f32.mrf.mxu1  ;;  %v977_v49 = vld [vmem:[#allocation3 + $0x8] sm:$0xff]  ;;  %v2642_v60 = vpop.f32.mrf.mxu0 }
  0xee   : > { %833 = vst.msk [vmem:[#allocation3 + $0x38] sm:$0xff] %vm825_vm15, %v2623_v58 }
  0xef   : > { %v816_v25 = vpop.f32.mrf.mxu1  ;;  %v976_v1 = vld [vmem:[#allocation3] sm:$0xff]  ;;  %v1127_v2 = vpop.f32.mrf.mxu0 }
  0xf0   : > { %832 = vst.msk [vmem:[#allocation3 + $0x30] sm:$0xff] %vm825_vm15, %v816_v25 }
  0xf1   : > { %v2628_v61 = vpop.f32.mrf.mxu1  ;;  %v979_v44 = vld [vmem:[#allocation3 + $0x18] sm:$0xff]  ;;  %v2645_v62 = vpop.f32.mrf.mxu0  ;;  %v981_v18 = vld [vmem:[#allocation3 + $0x28] sm:$0xff] }
  0xf2   : > { %v985_v63 = vadd.f32 %v2628_v61, %v977_v49 }
  0xf3   : > { %v937_v8 = vpop.f32.mrf.mxu1  ;;  %v978_v12 = vld [vmem:[#allocation3 + $0x10] sm:$0xff]  ;;  %v1137_v13 = vpop.f32.mrf.mxu0  ;;  %v980_v28 = vld [vmem:[#allocation3 + $0x20] sm:$0xff] }
  0xf4   : > { %993 = vst.msk [vmem:[#allocation3 + $0x8] sm:$0xff] %vm825_vm15, %v985_v63  ;;  %v984_v9 = vadd.f32 %v976_v1, %v937_v8 }
  0xf5   : > { %v2631_v10 = vpop.f32.mrf.mxu1  ;;  %v2648_v16 = vpop.f32.mrf.mxu0  ;;  %v983_v40 = vld [vmem:[#allocation3 + $0x38] sm:$0xff] }
  0xf6   : > { %992 = vst.msk [vmem:[#allocation3] sm:$0xff] %vm825_vm15, %v984_v9  ;;  %v987_v11 = vadd.f32 %v2631_v10, %v979_v44 }
  0xf7   : > { %v947_v15 = vpop.f32.mrf.mxu1  ;;  %v1147_v21 = vpop.f32.mrf.mxu0  ;;  %v982_v19 = vld [vmem:[#allocation3 + $0x30] sm:$0xff] }
  0xf8   : > { %995 = vst.msk [vmem:[#allocation3 + $0x18] sm:$0xff] %vm825_vm15, %v987_v11  ;;  %v986_v0 = vadd.f32 %v978_v12, %v947_v15 }
  0xf9   : > { %v2634_v17 = vpop.f32.mrf.mxu1  ;;  %v2651_v37 = vpop.f32.mrf.mxu0 }
  0xfa   : > { %994 = vst.msk [vmem:[#allocation3 + $0x10] sm:$0xff] %vm825_vm15, %v986_v0  ;;  %v989_v20 = vadd.f32 %v2634_v17, %v981_v18 }
  0xfb   : > { %v1167_v22 = vld [vmem:[#allocation3 + $0x8] sm:$0xff]  ;;  %v957_v26 = vpop.f32.mrf.mxu1  ;;  %v1157_v29 = vpop.f32.mrf.mxu0 }
  0xfc   : > { %997 = vst.msk [vmem:[#allocation3 + $0x28] sm:$0xff] %vm825_vm15, %v989_v20  ;;  %v1175_v32 = vadd.f32 %v2642_v60, %v1167_v22  ;;  %v988_v34 = vadd.f32 %v980_v28, %v957_v26 }
  0xfd   : > { %v1166_v5 = vld [vmem:[#allocation3] sm:$0xff]  ;;  %v2637_v6 = vpop.f32.mrf.mxu1  ;;  %v2670_v31 = vpop.f32.mrf.mxu0 }
  0xfe   : > { %1183 = vst.msk [vmem:[#allocation3 + $0x8] sm:$0xff] %vm825_vm15, %v1175_v32  ;;  %996 = vst.msk [vmem:[#allocation3 + $0x20] sm:$0xff] %vm825_vm15, %v988_v34  ;;  %v1174_v41 = vadd.f32 %v1166_v5, %v1127_v2  ;;  %v991_v7 = vadd.f32 %v2637_v6, %v983_v40 }
  0xff   : > { %v1169_v43 = vld [vmem:[#allocation3 + $0x18] sm:$0xff]  ;;  %v967_v23 = vpop.f32.mrf.mxu1  ;;  %v1467_v46 = vpop.f32.mrf.mxu0 }
 0x100   : > { %1182 = vst.msk [vmem:[#allocation3] sm:$0xff] %vm825_vm15, %v1174_v41  ;;  %999 = vst.msk [vmem:[#allocation3 + $0x38] sm:$0xff] %vm825_vm15, %v991_v7  ;;  %v1177_v24 = vadd.f32 %v2645_v62, %v1169_v43  ;;  %v990_v30 = vadd.f32 %v982_v19, %v967_v23 }
 0x101   : > { %v1168_v14 = vld [vmem:[#allocation3 + $0x10] sm:$0xff]  ;;  %v2656_v33 = vpop.f32.mrf.mxu1  ;;  %v2673_v45 = vpop.f32.mrf.mxu0 }
 0x102   : > { %1185 = vst.msk [vmem:[#allocation3 + $0x18] sm:$0xff] %vm825_vm15, %v1177_v24  ;;  %998 = vst.msk [vmem:[#allocation3 + $0x30] sm:$0xff] %vm825_vm15, %v990_v30  ;;  %v1176_v39 = vadd.f32 %v1168_v14, %v1137_v13 }
 0x103   : > { %v1171_v47 = vld [vmem:[#allocation3 + $0x28] sm:$0xff]  ;;  %v1301_v27 = vpop.f32.mrf.mxu1  ;;  %v1477_v50 = vpop.f32.mrf.mxu0 }
 0x104   : > { %1184 = vst.msk [vmem:[#allocation3 + $0x10] sm:$0xff] %vm825_vm15, %v1176_v39  ;;  %v1179_v35 = vadd.f32 %v2648_v16, %v1171_v47 }
 0x105   : > { %v1170_v38 = vld [vmem:[#allocation3 + $0x20] sm:$0xff]  ;;  %v1341_v3 = vld [vmem:[#allocation3 + $0x8] sm:$0xff]  ;;  %v2659_v36 = vpop.f32.mrf.mxu1  ;;  %v2676_v55 = vpop.f32.mrf.mxu0 }
 0x106   : > { %1187 = vst.msk [vmem:[#allocation3 + $0x28] sm:$0xff] %vm825_vm15, %v1179_v35  ;;  %v1178_v42 = vadd.f32 %v1170_v38, %v1147_v21  ;;  %v1349_v48 = vadd.f32 %v2656_v33, %v1341_v3 }
 0x107   : > { %v1173_v51 = vld [vmem:[#allocation3 + $0x38] sm:$0xff]  ;;  %v1340_v4 = vld [vmem:[#allocation3] sm:$0xff]  ;;  %v1311_v52 = vpop.f32.mrf.mxu1  ;;  %v1487_v49 = vpop.f32.mrf.mxu0 }
 0x108   : > { %1186 = vst.msk [vmem:[#allocation3 + $0x20] sm:$0xff] %vm825_vm15, %v1178_v42  ;;  %1357 = vst.msk [vmem:[#allocation3 + $0x8] sm:$0xff] %vm825_vm15, %v1349_v48  ;;  %v1181_v53 = vadd.f32 %v2651_v37, %v1173_v51  ;;  %v1348_v54 = vadd.f32 %v1340_v4, %v1301_v27 }
 0x109   : > { %v1172_v56 = vld [vmem:[#allocation3 + $0x30] sm:$0xff]  ;;  %v1343_v57 = vld [vmem:[#allocation3 + $0x18] sm:$0xff]  ;;  %v2662_v58 = vpop.f32.mrf.mxu1  ;;  %v2679_v1 = vpop.f32.mrf.mxu0 }
 0x10a   : > { %1189 = vst.msk [vmem:[#allocation3 + $0x38] sm:$0xff] %vm825_vm15, %v1181_v53  ;;  %1356 = vst.msk [vmem:[#allocation3] sm:$0xff] %vm825_vm15, %v1348_v54  ;;  %v1180_v59 = vadd.f32 %v1172_v56, %v1157_v29  ;;  %v1351_v25 = vadd.f32 %v2659_v36, %v1343_v57 }
 0x10b   : > { %v1342_v60 = vld [vmem:[#allocation3 + $0x10] sm:$0xff]  ;;  %v1321_v61 = vpop.f32.mrf.mxu1  ;;  %v1497_v44 = vpop.f32.mrf.mxu0 }
 0x10c   : > { %1188 = vst.msk [vmem:[#allocation3 + $0x30] sm:$0xff] %vm825_vm15, %v1180_v59  ;;  %1359 = vst.msk [vmem:[#allocation3 + $0x18] sm:$0xff] %vm825_vm15, %v1351_v25  ;;  %v1350_v63 = vadd.f32 %v1342_v60, %v1311_v52 }
 0x10d   : > { %v1345_v2 = vld [vmem:[#allocation3 + $0x28] sm:$0xff]  ;;  %v2665_v8 = vpop.f32.mrf.mxu1  ;;  %v3380_v15 = vpop.f32.mrf.mxu0 }
 0x10e   : > { %1358 = vst.msk [vmem:[#allocation3 + $0x10] sm:$0xff] %vm825_vm15, %v1350_v63  ;;  %v1353_v9 = vadd.f32 %v2662_v58, %v1345_v2 }
 0x10f   : > { %v1344_v62 = vld [vmem:[#allocation3 + $0x20] sm:$0xff]  ;;  %v1507_v10 = vld [vmem:[#allocation3 + $0x8] sm:$0xff]  ;;  %v1331_v11 = vpop.f32.mrf.mxu1  ;;  %v1815_v21 = vpop.f32.mrf.mxu0 }
 0x110   : > { %1361 = vst.msk [vmem:[#allocation3 + $0x28] sm:$0xff] %vm825_vm15, %v1353_v9  ;;  %v1352_v12 = vadd.f32 %v1344_v62, %v1321_v61  ;;  %v1515_v13 = vadd.f32 %v2670_v31, %v1507_v10 }
 0x111   : > { %v1347_v0 = vld [vmem:[#allocation3 + $0x38] sm:$0xff]  ;;  %v1506_v16 = vld [vmem:[#allocation3] sm:$0xff]  ;;  %v2684_v17 = vpop.f32.mrf.mxu1  ;;  %v2701_v37 = vpop.f32.mrf.mxu0 }
 0x112   : > { %1360 = vst.msk [vmem:[#allocation3 + $0x20] sm:$0xff] %vm825_vm15, %v1352_v12  ;;  %1523 = vst.msk [vmem:[#allocation3 + $0x8] sm:$0xff] %vm825_vm15, %v1515_v13  ;;  %v1355_v18 = vadd.f32 %v2665_v8, %v1347_v0  ;;  %v1514_v20 = vadd.f32 %v1506_v16, %v1467_v46 }
 0x113   : > { %v1346_v22 = vld [vmem:[#allocation3 + $0x30] sm:$0xff]  ;;  %v1509_v26 = vld [vmem:[#allocation3 + $0x18] sm:$0xff]  ;;  %v1641_v28 = vpop.f32.mrf.mxu1  ;;  %v1825_v29 = vpop.f32.mrf.mxu0 }
 0x114   : > { %1363 = vst.msk [vmem:[#allocation3 + $0x38] sm:$0xff] %vm825_vm15, %v1355_v18  ;;  %1522 = vst.msk [vmem:[#allocation3] sm:$0xff] %vm825_vm15, %v1514_v20  ;;  %v1354_v32 = vadd.f32 %v1346_v22, %v1331_v11  ;;  %v1517_v34 = vadd.f32 %v2673_v45, %v1509_v26 }
 0x115   : > { %v1508_v5 = vld [vmem:[#allocation3 + $0x10] sm:$0xff]  ;;  %v2687_v6 = vpop.f32.mrf.mxu1  ;;  %v2704_v46 = vpop.f32.mrf.mxu0 }
 0x116   : > { %1362 = vst.msk [vmem:[#allocation3 + $0x30] sm:$0xff] %vm825_vm15, %v1354_v32  ;;  %1525 = vst.msk [vmem:[#allocation3 + $0x18] sm:$0xff] %vm825_vm15, %v1517_v34  ;;  %v1516_v40 = vadd.f32 %v1508_v5, %v1477_v50 }
 0x117   : > { %v1511_v41 = vld [vmem:[#allocation3 + $0x28] sm:$0xff]  ;;  %v1651_v7 = vpop.f32.mrf.mxu1  ;;  %v1835_v50 = vpop.f32.mrf.mxu0 }
 0x118   : > { %1524 = vst.msk [vmem:[#allocation3 + $0x10] sm:$0xff] %vm825_vm15, %v1516_v40  ;;  %v1519_v43 = vadd.f32 %v2676_v55, %v1511_v41 }
 0x119   : > { %v1510_v23 = vld [vmem:[#allocation3 + $0x20] sm:$0xff]  ;;  %v1681_v19 = vld [vmem:[#allocation3 + $0x8] sm:$0xff]  ;;  %v2690_v24 = vpop.f32.mrf.mxu1  ;;  %v2707_v56 = vpop.f32.mrf.mxu0 }
 0x11a   : > { %1527 = vst.msk [vmem:[#allocation3 + $0x28] sm:$0xff] %vm825_vm15, %v1519_v43  ;;  %v1518_v30 = vadd.f32 %v1510_v23, %v1487_v49  ;;  %v1689_v31 = vadd.f32 %v2684_v17, %v1681_v19 }
 0x11b   : > { %v1513_v14 = vld [vmem:[#allocation3 + $0x38] sm:$0xff]  ;;  %v1680_v33 = vld [vmem:[#allocation3] sm:$0xff]  ;;  %v1661_v39 = vpop.f32.mrf.mxu1  ;;  %v1845_v2 = vpop.f32.mrf.mxu0 }
 0x11c   : > { %1526 = vst.msk [vmem:[#allocation3 + $0x20] sm:$0xff] %vm825_vm15, %v1518_v30  ;;  %1697 = vst.msk [vmem:[#allocation3 + $0x8] sm:$0xff] %vm825_vm15, %v1689_v31  ;;  %v1521_v47 = vadd.f32 %v2679_v1, %v1513_v14  ;;  %v1688_v27 = vadd.f32 %v1680_v33, %v1641_v28 }
 0x11d   : > { %v1512_v35 = vld [vmem:[#allocation3 + $0x30] sm:$0xff]  ;;  %v1683_v45 = vld [vmem:[#allocation3 + $0x18] sm:$0xff]  ;;  %v2693_v38 = vpop.f32.mrf.mxu1  ;;  %v2726_v10 = vpop.f32.mrf.mxu0 }
 0x11e   : > { %1529 = vst.msk [vmem:[#allocation3 + $0x38] sm:$0xff] %vm825_vm15, %v1521_v47  ;;  %1696 = vst.msk [vmem:[#allocation3] sm:$0xff] %vm825_vm15, %v1688_v27  ;;  %v1520_v3 = vadd.f32 %v1512_v35, %v1497_v44  ;;  %v1691_v36 = vadd.f32 %v2687_v6, %v1683_v45 }
 0x11f   : > { %v1682_v42 = vld [vmem:[#allocation3 + $0x10] sm:$0xff]  ;;  %v1671_v48 = vpop.f32.mrf.mxu1  ;;  %v2155_v17 = vpop.f32.mrf.mxu0 }
 0x120   : > { %1528 = vst.msk [vmem:[#allocation3 + $0x30] sm:$0xff] %vm825_vm15, %v1520_v3  ;;  %1699 = vst.msk [vmem:[#allocation3 + $0x18] sm:$0xff] %vm825_vm15, %v1691_v36  ;;  %v1690_v51 = vadd.f32 %v1682_v42, %v1651_v7 }
 0x121   : > { %v1685_v4 = vld [vmem:[#allocation3 + $0x28] sm:$0xff]  ;;  %v2712_v52 = vpop.f32.mrf.mxu1  ;;  %v2729_v5 = vpop.f32.mrf.mxu0 }
 0x122   : > { %1698 = vst.msk [vmem:[#allocation3 + $0x10] sm:$0xff] %vm825_vm15, %v1690_v51  ;;  %v1693_v53 = vadd.f32 %v2690_v24, %v1685_v4  ;;  %v2520_v4 = vld [vmem:[%s3464_s4] ss:$0 sm:$0xff] }
 0x123   : > { %v1684_v54 = vld [vmem:[#allocation3 + $0x20] sm:$0xff]  ;;  %v1855_v55 = vld [vmem:[#allocation3 + $0x8] sm:$0xff]  ;;  %v1981_v57 = vpop.f32.mrf.mxu1  ;;  %v2165_v23 = vpop.f32.mrf.mxu0 }
 0x124   : > { %1701 = vst.msk [vmem:[#allocation3 + $0x28] sm:$0xff] %vm825_vm15, %v1693_v53  ;;  %v1692_v58 = vadd.f32 %v1684_v54, %v1661_v39  ;;  %v1863_v59 = vadd.f32 %v3380_v15, %v1855_v55 }
 0x125   : > { %v1687_v25 = vld [vmem:[#allocation3 + $0x38] sm:$0xff]  ;;  %v1854_v49 = vld [vmem:[#allocation3] sm:$0xff]  ;;  %v2715_v8 = vpop.f32.mrf.mxu1  ;;  %v2732_v47 = vpop.f32.mrf.mxu0 }
 0x126   : > { %1700 = vst.msk [vmem:[#allocation3 + $0x20] sm:$0xff] %vm825_vm15, %v1692_v58  ;;  %1871 = vst.msk [vmem:[#allocation3 + $0x8] sm:$0xff] %vm825_vm15, %v1863_v59  ;;  %v1695_v60 = vadd.f32 %v2693_v38, %v1687_v25  ;;  %v1862_v61 = vadd.f32 %v1854_v49, %v1815_v21 }
 0x127   : > { %v1686_v63 = vld [vmem:[#allocation3 + $0x30] sm:$0xff]  ;;  %v1857_v1 = vld [vmem:[#allocation3 + $0x18] sm:$0xff]  ;;  %v1991_v13 = vpop.f32.mrf.mxu1 }
 0x128   : > { %1703 = vst.msk [vmem:[#allocation3 + $0x38] sm:$0xff] %vm825_vm15, %v1695_v60  ;;  %1870 = vst.msk [vmem:[#allocation3] sm:$0xff] %vm825_vm15, %v1862_v61  ;;  %v1694_v9 = vadd.f32 %v1686_v63, %v1671_v48  ;;  %v1865_v44 = vadd.f32 %v2701_v37, %v1857_v1 }
 0x129   : > { %v1856_v62 = vld [vmem:[#allocation3 + $0x10] sm:$0xff]  ;;  %v2718_v26 = vpop.f32.mrf.mxu1 }
 0x12a   : > { %1702 = vst.msk [vmem:[#allocation3 + $0x30] sm:$0xff] %vm825_vm15, %v1694_v9  ;;  %1873 = vst.msk [vmem:[#allocation3 + $0x18] sm:$0xff] %vm825_vm15, %v1865_v44  ;;  %v1864_v11 = vadd.f32 %v1856_v62, %v1825_v29 }
 0x12b   : > { %v1859_v12 = vld [vmem:[#allocation3 + $0x28] sm:$0xff]  ;;  %v2001_v7 = vpop.f32.mrf.mxu1 }
 0x12c   : > { %1872 = vst.msk [vmem:[#allocation3 + $0x10] sm:$0xff] %vm825_vm15, %v1864_v11  ;;  %v1867_v15 = vadd.f32 %v2704_v46, %v1859_v12 }
 0x12d   : > { %v1858_v0 = vld [vmem:[#allocation3 + $0x20] sm:$0xff]  ;;  %v2021_v16 = vld [vmem:[#allocation3 + $0x8] sm:$0xff]  ;;  %v2721_v31 = vpop.f32.mrf.mxu1 }
 0x12e   : > { %1875 = vst.msk [vmem:[#allocation3 + $0x28] sm:$0xff] %vm825_vm15, %v1867_v15  ;;  %v1866_v18 = vadd.f32 %v1858_v0, %v1835_v50  ;;  %v2029_v20 = vadd.f32 %v2712_v52, %v2021_v16  ;;  %v2175_v50 = vpop.f32.mrf.mxu0 }
 0x12f   : > { %v1861_v21 = vld [vmem:[#allocation3 + $0x38] sm:$0xff]  ;;  %v2020_v22 = vld [vmem:[#allocation3] sm:$0xff]  ;;  %v2011_v45 = vpop.f32.mrf.mxu1 }
 0x130   : > { %1874 = vst.msk [vmem:[#allocation3 + $0x20] sm:$0xff] %vm825_vm15, %v1866_v18  ;;  %2037 = vst.msk [vmem:[#allocation3 + $0x8] sm:$0xff] %vm825_vm15, %v2029_v20  ;;  %v1869_v28 = vadd.f32 %v2707_v56, %v1861_v21  ;;  %v2028_v32 = vadd.f32 %v2020_v22, %v1981_v57  ;;  %v2735_v56 = vpop.f32.mrf.mxu0 }
 0x131   : > { %v1860_v34 = vld [vmem:[#allocation3 + $0x30] sm:$0xff]  ;;  %v2023_v37 = vld [vmem:[#allocation3 + $0x18] sm:$0xff] }
 0x132   : > { %1877 = vst.msk [vmem:[#allocation3 + $0x38] sm:$0xff] %vm825_vm15, %v1869_v28  ;;  %2036 = vst.msk [vmem:[#allocation3] sm:$0xff] %vm825_vm15, %v2028_v32  ;;  %v1868_v6 = vadd.f32 %v1860_v34, %v1845_v2  ;;  %v2031_v40 = vadd.f32 %v2715_v8, %v2023_v37  ;;  %v2185_v1 = vpop.f32.mrf.mxu0 }
 0x133   : > { %v2022_v41 = vld [vmem:[#allocation3 + $0x10] sm:$0xff] }
 0x134   : > { %1876 = vst.msk [vmem:[#allocation3 + $0x30] sm:$0xff] %vm825_vm15, %v1868_v6  ;;  %2039 = vst.msk [vmem:[#allocation3 + $0x18] sm:$0xff] %vm825_vm15, %v2031_v40  ;;  %v2030_v29 = vadd.f32 %v2022_v41, %v1991_v13 }
 0x135   : > { %v2025_v43 = vld [vmem:[#allocation3 + $0x28] sm:$0xff] }
 0x136   : > { %2038 = vst.msk [vmem:[#allocation3 + $0x10] sm:$0xff] %vm825_vm15, %v2030_v29  ;;  %v2033_v19 = vadd.f32 %v2718_v26, %v2025_v43 }
 0x137   : > { %v2024_v24 = vld [vmem:[#allocation3 + $0x20] sm:$0xff]  ;;  %v2195_v30 = vld [vmem:[#allocation3 + $0x8] sm:$0xff] }
 0x138   : > { %2041 = vst.msk [vmem:[#allocation3 + $0x28] sm:$0xff] %vm825_vm15, %v2033_v19  ;;  %v2032_v14 = vadd.f32 %v2024_v24, %v2001_v7  ;;  %v2203_v33 = vadd.f32 %v2726_v10, %v2195_v30 }
 0x139   : > { %v2027_v39 = vld [vmem:[#allocation3 + $0x38] sm:$0xff]  ;;  %v2194_v46 = vld [vmem:[#allocation3] sm:$0xff] }
 0x13a   : > { %2040 = vst.msk [vmem:[#allocation3 + $0x20] sm:$0xff] %vm825_vm15, %v2032_v14  ;;  %2211 = vst.msk [vmem:[#allocation3 + $0x8] sm:$0xff] %vm825_vm15, %v2203_v33  ;;  %v2035_v27 = vadd.f32 %v2721_v31, %v2027_v39  ;;  %v2202_v35 = vadd.f32 %v2194_v46, %v2155_v17 }
 0x13b   : > { %v2026_v38 = vld [vmem:[#allocation3 + $0x30] sm:$0xff]  ;;  %v2197_v3 = vld [vmem:[#allocation3 + $0x18] sm:$0xff] }
 0x13c   : > { %2043 = vst.msk [vmem:[#allocation3 + $0x38] sm:$0xff] %vm825_vm15, %v2035_v27  ;;  %2210 = vst.msk [vmem:[#allocation3] sm:$0xff] %vm825_vm15, %v2202_v35  ;;  %v2034_v36 = vadd.f32 %v2026_v38, %v2011_v45  ;;  %v2205_v42 = vadd.f32 %v2729_v5, %v2197_v3 }
 0x13d   : > { %v2196_v48 = vld [vmem:[#allocation3 + $0x10] sm:$0xff] }
 0x13e   : > { %2042 = vst.msk [vmem:[#allocation3 + $0x30] sm:$0xff] %vm825_vm15, %v2034_v36  ;;  %2213 = vst.msk [vmem:[#allocation3 + $0x18] sm:$0xff] %vm825_vm15, %v2205_v42  ;;  %v2204_v51 = vadd.f32 %v2196_v48, %v2165_v23 }
 0x13f   : > { %v2199_v52 = vld [vmem:[#allocation3 + $0x28] sm:$0xff] }
 0x140   : > { %2212 = vst.msk [vmem:[#allocation3 + $0x10] sm:$0xff] %vm825_vm15, %v2204_v51  ;;  %v2207_v53 = vadd.f32 %v2732_v47, %v2199_v52 }
 0x141   : > { %v2219_v54 = vld [vmem:[#allocation3 + $0x8] sm:$0xff]  ;;  %v2198_v55 = vld [vmem:[#allocation3 + $0x20] sm:$0xff] }
 0x142   : > { %v2234_v57 = vadd.f32 %v2520_v4, %v2219_v54  ;;  %2215 = vst.msk [vmem:[#allocation3 + $0x28] sm:$0xff] %vm825_vm15, %v2207_v53  ;;  %v2206_v58 = vadd.f32 %v2198_v55, %v2175_v50 }
 0x143   : > { %v2218_v59 = vld [vmem:[#allocation3] sm:$0xff]  ;;  %v2201_v25 = vld [vmem:[#allocation3 + $0x38] sm:$0xff] }
 0x144   : > { %v2242_v49 = vmax.f32 %v2234_v57, 0.0  ;;  %v2233_v60 = vadd.f32 %v2520_v4, %v2218_v59  ;;  %2214 = vst.msk [vmem:[#allocation3 + $0x20] sm:$0xff] %vm825_vm15, %v2206_v58  ;;  %v2209_v61 = vadd.f32 %v2735_v56, %v2201_v25 }
 0x145   : > { %v2221_v63 = vld [vmem:[#allocation3 + $0x18] sm:$0xff]  ;;  %v2200_v2 = vld [vmem:[#allocation3 + $0x30] sm:$0xff] }
 0x146   : > { %2250 = vst.msk [vmem:[%s3430_s24 + $0x8] sm:$0xff] %vm825_vm15, %v2242_v49  ;;  %v2241_v8 = vmax.f32 %v2233_v60, 0.0  ;;  %v2236_v9 = vadd.f32 %v2520_v4, %v2221_v63  ;;  %2217 = vst.msk [vmem:[#allocation3 + $0x38] sm:$0xff] %vm825_vm15, %v2209_v61  ;;  %v2208_v44 = vadd.f32 %v2200_v2, %v2185_v1 }
 0x147   : > { %v2220_v62 = vld [vmem:[#allocation3 + $0x10] sm:$0xff] }
 0x148   : > { %2249 = vst.msk [vmem:[%s3430_s24] sm:$0xff] %vm825_vm15, %v2241_v8  ;;  %v2244_v10 = vmax.f32 %v2236_v9, 0.0  ;;  %v2235_v11 = vadd.f32 %v2520_v4, %v2220_v62  ;;  %2216 = vst.msk [vmem:[#allocation3 + $0x30] sm:$0xff] %vm825_vm15, %v2208_v44 }
 0x149   : > { %v2223_v12 = vld [vmem:[#allocation3 + $0x28] sm:$0xff] }
 0x14a   : > { %2252 = vst.msk [vmem:[%s3430_s24 + $0x18] sm:$0xff] %vm825_vm15, %v2244_v10  ;;  %v2243_v13 = vmax.f32 %v2235_v11, 0.0  ;;  %v2238_v15 = vadd.f32 %v2520_v4, %v2223_v12 }
 0x14b   : > { %v2222_v0 = vld [vmem:[#allocation3 + $0x20] sm:$0xff] }
 0x14c   : > { %2251 = vst.msk [vmem:[%s3430_s24 + $0x10] sm:$0xff] %vm825_vm15, %v2243_v13  ;;  %v2246_v16 = vmax.f32 %v2238_v15, 0.0  ;;  %v2237_v17 = vadd.f32 %v2520_v4, %v2222_v0 }
 0x14d   : > { %v2225_v18 = vld [vmem:[#allocation3 + $0x38] sm:$0xff] }
 0x14e   : > { %2254 = vst.msk [vmem:[%s3430_s24 + $0x28] sm:$0xff] %vm825_vm15, %v2246_v16  ;;  %v2245_v20 = vmax.f32 %v2237_v17, 0.0  ;;  %v2240_v21 = vadd.f32 %v2520_v4, %v2225_v18 }
 0x14f   : > { %v2224_v22 = vld [vmem:[#allocation3 + $0x30] sm:$0xff] }
 0x150   : > { %2253 = vst.msk [vmem:[%s3430_s24 + $0x20] sm:$0xff] %vm825_vm15, %v2245_v20  ;;  %v2248_v26 = vmax.f32 %v2240_v21, 0.0  ;;  %v2239_v28 = vadd.f32 %v2520_v4, %v2224_v22 }
 0x152   : > { %2256 = vst.msk [vmem:[%s3430_s24 + $0x38] sm:$0xff] %vm825_vm15, %v2248_v26  ;;  %v2247_v32 = vmax.f32 %v2239_v28, 0.0 }
 0x154   : > { %2255 = vst.msk [vmem:[%s3430_s24 + $0x30] sm:$0xff] %vm825_vm15, %v2247_v32 }
 0x155 PF: > { %s15_s20 = sadd.s32 1, %s2809_s20   ;;  %s3580_s18 = smov %s2805_s19 }
 0x156   : > { %p12_p6 = scmp.ge.s32.totalorder %s15_s20, 4   ;;  %s3581_s19 = smov %s3583_s1 }
 0x158   :  { %14 = sbr.rel (!%p12_p6) target bundleno = 2 (0x2), region = 179 }

</bundles_post_ra>
